<compile_context>
chip_gen: v7x
topology: tpu7x:2x2x1
jax: 0.10.0
libtpu: 0.0.40
codegen_flags: <defaults>
</compile_context>

<pallas_src>
import functools

import numpy as np

import jax
import jax.numpy as jnp
from jax import lax
from jax.experimental import pallas as pl
from jax.experimental.pallas import tpu as pltpu


# ----------------------- constant selection matrices ------------------------
# Tiny (64 KB + 4 KB + 256 B) exact 0/1 (or 0.25) matrices; read into VMEM once.

def _maxpool_compaction(h, w):
    """(h*w, (h//2)*(w//2)) 0/1 matrix picking lane 2*i*w + 2*j for output (i, j)."""
    ho, wo = h // 2, w // 2
    m = np.zeros((h * w, ho * wo), np.float32)
    for i in range(ho):
        for j in range(wo):
            m[(2 * i) * w + 2 * j, i * wo + j] = 1.0
    return m


def _avgpool_2x2_matrix(h, w):
    """(h*w, (h//2)*(w//2)) matrix with 0.25 on the 4 taps of each 2x2 window."""
    # TODO(synk): general AdaptiveAvgPool2d with non-divisible bins is not implemented
    # (not needed here: 4x4 -> 2x2 is an exact 2x2 mean pool).
    ho, wo = h // 2, w // 2
    m = np.zeros((h * w, ho * wo), np.float32)
    for i in range(ho):
        for j in range(wo):
            for di in range(2):
                for dj in range(2):
                    m[(2 * i + di) * w + (2 * j + dj), i * wo + j] = 0.25
    return m


# ------------------------------ kernel helpers -------------------------------

def _roll_convention_mask(shape):
    """Uniform boolean mask: all-True iff pltpu.roll follows jnp.roll's convention
    (result[i] = x[(i - shift) % n]); all-False for the opposite convention."""
    n = shape[-1]
    idx = lax.broadcasted_iota(jnp.int32, shape, 1)
    idx_f = idx.astype(jnp.float32)
    probe = pltpu.roll(idx_f, 1, axis=1)
    expect = jnp.where(idx == 0, jnp.float32(n - 1), idx_f - 1.0)  # == jnp.roll(idx, 1)
    return probe == expect


def _shift_plus(v, s, roll_fwd):
    """Cyclic lane shift: y[..., i] = v[..., (i + s) % n], independent of the rotation
    direction convention of pltpu.roll (roll_fwd selects the right candidate)."""
    n = v.shape[-1]
    s = s % n
    if s == 0:
        return v
    a = pltpu.roll(v, n - s, axis=1)   # correct if pltpu.roll matches jnp.roll
    b = pltpu.roll(v, s, axis=1)       # correct for the opposite convention
    return jnp.where(roll_fwd, a, b)


def _conv3x3_relu(act, wt_ref, b_ref, h, w):
    """3x3 / stride-1 / pad-1 conv + bias + ReLU on a (C_in, h*w) lane-flattened tile.

    wt_ref: (9, C_out, C_in) with tap index t = kh*3 + kw;  b_ref: (C_out, 1).
    w must be a power of two (spatial index decoded with shifts/ands).
    """
    c_in, n = act.shape
    roll_fwd = _roll_convention_mask((c_in, n))
    lane = lax.broadcasted_iota(jnp.int32, (c_in, n), 1)
    row = lane >> (w.bit_length() - 1)     # lane // w
    col = lane & (w - 1)                   # lane %  w

    acc = None
    for kh in range(3):
        for kw in range(3):
            dh, dw = kh - 1, kw - 1
            tap = _shift_plus(act, dh * w + dw, roll_fwd)
            # zero lanes whose source pixel (row+dh, col+dw) is out of bounds (zero padding)
            conds = []
            if dh == -1:
                conds.append(row >= 1)
            elif dh == 1:
                conds.append(row <= h - 2)
            if dw == -1:
                conds.append(col >= 1)
            elif dw == 1:
                conds.append(col <= w - 2)
            if conds:
                ok = conds[0]
                for extra in conds[1:]:
                    ok = jnp.logical_and(ok, extra)
                tap = jnp.where(ok, tap, 0.0)
            part = jnp.dot(wt_ref[kh * 3 + kw], tap,
                           preferred_element_type=jnp.float32)
            acc = part if acc is None else acc + part
    return jnp.maximum(acc + b_ref[...], 0.0)


def _maxpool2x2(act, sel_ref, w):
    """2x2 / stride-2 max pool on a (C, h*w) lane-flattened tile (row width w, h, w even).

    sel_ref: (h*w, h*w/4) exact 0/1 compaction matrix (picks lane 2*i*w + 2*j).
    """
    roll_fwd = _roll_convention_mask(act.shape)
    m = act
    for dh in (0, 1):
        for dw in (0, 1):
            if dh or dw:
                m = jnp.maximum(m, _shift_plus(act, dh * w + dw, roll_fwd))
    return jnp.dot(m, sel_ref[...], preferred_element_type=jnp.float32)


# ------------------------------ fused kernel ---------------------------------

def _fused_forward_kernel(x_ref, w1_ref, b1_ref, w2_ref, b2_ref,
                          p1_ref, p2_ref, avg_ref, o_ref, *, h, w):
    # x_ref:  (1, Ci, h*w)      one image, spatial flattened onto lanes
    # w1_ref: (9, C1, Ci)       per-tap conv1 weights     b1_ref: (C1, 1)
    # w2_ref: (9, C2, C1)       per-tap conv2 weights     b2_ref: (C2, 1)
    # p1_ref: (h*w,   h*w/4)    maxpool1 compaction       p2_ref: (h*w/4, h*w/16)
    # avg_ref:(h*w/16, h*w/64)  adaptive-avg-pool(2,2)
    # o_ref:  (1, C2, h*w/64)
    x = x_ref[0]                                         # (Ci, h*w)
    a = _conv3x3_relu(x, w1_ref, b1_ref, h, w)           # (C1, h*w)
    a = _maxpool2x2(a, p1_ref, w)                        # (C1, h*w/4)
    a = _conv3x3_relu(a, w2_ref, b2_ref, h // 2, w // 2) # (C2, h*w/4)
    a = _maxpool2x2(a, p2_ref, w // 2)                   # (C2, h*w/16)
    a = jnp.dot(a, avg_ref[...],                         # (C2, h*w/64)
                preferred_element_type=jnp.float32)
    o_ref[0] = a.astype(o_ref.dtype)


# ------------------------------ JAX wrappers ---------------------------------

def init_params(key):
    k1, k2, k3, k4 = jax.random.split(key, 4)
    w1 = 0.1 * jax.random.normal(k1, (8, 4, 3, 3), jnp.float32)
    b1 = 0.1 * jax.random.normal(k2, (8,), jnp.float32)
    w2 = 0.1 * jax.random.normal(k3, (16, 8, 3, 3), jnp.float32)
    b2 = 0.1 * jax.random.normal(k4, (16,), jnp.float32)
    return (w1, b1, w2, b2)


@jax.jit
def feature_extractor_forward(x, params):
    """Pallas implementation of FeatureExtractor.forward: features -> avgpool -> flatten."""
    w1, b1, w2, b2 = params
    B, Ci, H, W = x.shape                   # (2, 4, 16, 16); W, W//2 must be powers of two
    C1, C2 = w1.shape[0], w2.shape[0]       # 8, 16

    # Layout plumbing (free / tiny metadata reshapes) -- all heavy work is in the kernel.
    x_flat = x.reshape(B, Ci, H * W)                               # (B, 4, 256)
    w1_tap = jnp.transpose(w1, (2, 3, 0, 1)).reshape(9, C1, Ci)    # [t=kh*3+kw] -> (C1, Ci)
    w2_tap = jnp.transpose(w2, (2, 3, 0, 1)).reshape(9, C2, C1)
    b1_col = b1.reshape(C1, 1)
    b2_col = b2.reshape(C2, 1)
    p1sel = jnp.asarray(_maxpool_compaction(H, W))                 # (256, 64)
    p2sel = jnp.asarray(_maxpool_compaction(H // 2, W // 2))       # (64, 16)
    asel = jnp.asarray(_avgpool_2x2_matrix(H // 4, W // 4))        # (16, 4)
    n_out = asel.shape[1]

    kernel = functools.partial(_fused_forward_kernel, h=H, w=W)

    out = pl.pallas_call(
        kernel,
        out_shape=jax.ShapeDtypeStruct((B, C2, n_out), x.dtype),
        grid=(B,),
        in_specs=[
            pl.BlockSpec((1, Ci, H * W), lambda b: (b, 0, 0)),
            # everything below uses a constant index_map -> DMA'd once, VMEM-resident
            pl.BlockSpec((9, C1, Ci), lambda b: (0, 0, 0)),
            pl.BlockSpec((C1, 1), lambda b: (0, 0)),
            pl.BlockSpec((9, C2, C1), lambda b: (0, 0, 0)),
            pl.BlockSpec((C2, 1), lambda b: (0, 0)),
            pl.BlockSpec((H * W, (H // 2) * (W // 2)), lambda b: (0, 0)),
            pl.BlockSpec(((H // 2) * (W // 2), (H // 4) * (W // 4)), lambda b: (0, 0)),
            pl.BlockSpec(((H // 4) * (W // 4), n_out), lambda b: (0, 0)),
        ],
        out_specs=pl.BlockSpec((1, C2, n_out), lambda b: (b, 0, 0)),
        compiler_params=pltpu.CompilerParams(dimension_semantics=("parallel",)),
    )(x_flat, w1_tap, b1_col, w2_tap, b2_col, p1sel, p2sel, asel)

    return out.reshape(B, -1)               # nn.Flatten -> (B, 64)


def reference_forward(x, params):
    """Pure-JAX/XLA reference for correctness checking."""
    w1, b1, w2, b2 = params
    dn = ("NCHW", "OIHW", "NCHW")
    y = jax.lax.conv_general_dilated(x, w1, (1, 1), "SAME", dimension_numbers=dn)
    y = jnp.maximum(y + b1[None, :, None, None], 0.0)
    y = jax.lax.reduce_window(y, -jnp.inf, jax.lax.max, (1, 1, 2, 2), (1, 1, 2, 2), "VALID")
    y = jax.lax.conv_general_dilated(y, w2, (1, 1), "SAME", dimension_numbers=dn)
    y = jnp.maximum(y + b2[None, :, None, None], 0.0)
    y = jax.lax.reduce_window(y, -jnp.inf, jax.lax.max, (1, 1, 2, 2), (1, 1, 2, 2), "VALID")
    y = jax.lax.reduce_window(y, 0.0, jax.lax.add, (1, 1, 2, 2), (1, 1, 2, 2), "VALID") / 4.0
    return y.reshape(x.shape[0], -1)


if __name__ == "__main__":
    key = jax.random.PRNGKey(0)
    kx, kp = jax.random.split(key)
    x = jax.random.normal(kx, (2, 4, 16, 16), jnp.float32)   # NCHW, like PyTorch
    params = init_params(kp)

    out = feature_extractor_forward(x, params)
    out = jax.block_until_ready(out)

    ref = reference_forward(x, params)
    assert out.shape == (2, 64), out.shape
    assert jnp.allclose(out, ref, atol=1e-4, rtol=1e-4), "mismatch vs reference"

    print("KERNEL_OK")
</pallas_src>

<mosaic_0001>
module attributes {stable_mosaic.version = 11 : i64} {
  func.func @_fused_forward_kernel(%arg0: i32, %arg1: memref<1x4x256xf32, #tpu.memory_space<vmem>>, %arg2: memref<9x8x4xf32, #tpu.memory_space<vmem>>, %arg3: memref<8x1xf32, #tpu.memory_space<vmem>>, %arg4: memref<9x16x8xf32, #tpu.memory_space<vmem>>, %arg5: memref<16x1xf32, #tpu.memory_space<vmem>>, %arg6: memref<256x64xf32, #tpu.memory_space<vmem>>, %arg7: memref<64x16xf32, #tpu.memory_space<vmem>>, %arg8: memref<16x4xf32, #tpu.memory_space<vmem>>, %arg9: memref<1x16x4xf32, #tpu.memory_space<vmem>>) attributes {dimension_semantics = [#tpu.dimension_semantics<parallel>], iteration_bounds = array<i64: 2>, scalar_prefetch = 0 : i64, scratch_operands = 0 : i64, tpu.core_type = #tpu.core_type<tc>, window_params = [{transform_indices = @transform_0, window_bounds = array<i64: 1, 4, 256>}, {pipeline_mode = #tpu.pipeline_mode<synchronous>, transform_indices = @transform_1, window_bounds = array<i64: 9, 8, 4>}, {pipeline_mode = #tpu.pipeline_mode<synchronous>, transform_indices = @transform_2, window_bounds = array<i64: 8, 1>}, {pipeline_mode = #tpu.pipeline_mode<synchronous>, transform_indices = @transform_3, window_bounds = array<i64: 9, 16, 8>}, {pipeline_mode = #tpu.pipeline_mode<synchronous>, transform_indices = @transform_4, window_bounds = array<i64: 16, 1>}, {pipeline_mode = #tpu.pipeline_mode<synchronous>, transform_indices = @transform_5, window_bounds = array<i64: 256, 64>}, {pipeline_mode = #tpu.pipeline_mode<synchronous>, transform_indices = @transform_6, window_bounds = array<i64: 64, 16>}, {pipeline_mode = #tpu.pipeline_mode<synchronous>, transform_indices = @transform_7, window_bounds = array<i64: 16, 4>}, {transform_indices = @transform_8, window_bounds = array<i64: 1, 16, 4>}]} {
    %c0 = arith.constant 0 : index
    %c0_0 = arith.constant 0 : index
    %c0_1 = arith.constant 0 : index
    %0 = vector.load %arg1[%c0, %c0_0, %c0_1] : memref<1x4x256xf32, #tpu.memory_space<vmem>>, vector<1x4x256xf32>
    %1 = vector.shape_cast %0 : vector<1x4x256xf32> to vector<4x256xf32>
    %2 = tpu.iota {dimensions = array<i32: 1>} : vector<4x256xi32>
    %3 = arith.sitofp %2 : vector<4x256xi32> to vector<4x256xf32>
    %c1_i32 = arith.constant 1 : i32
    %4 = tpu.dynamic_rotate %3 by %c1_i32 dim 1 : vector<4x256xf32>, i32 -> vector<4x256xf32>
    %c0_i32 = arith.constant 0 : i32
    %5 = vector.broadcast %c0_i32 : i32 to vector<4x256xi32>
    %6 = arith.cmpi eq, %2, %5 : vector<4x256xi32>
    %cst = arith.constant 1.000000e+00 : f32
    %7 = vector.broadcast %cst : f32 to vector<4x256xf32>
    %8 = arith.subf %3, %7 : vector<4x256xf32>
    %cst_2 = arith.constant 2.550000e+02 : f32
    %9 = vector.broadcast %cst_2 : f32 to vector<4x256xf32>
    %10 = arith.select %6, %9, %8 : vector<4x256xi1>, vector<4x256xf32>
    %11 = arith.cmpf oeq, %4, %10 : vector<4x256xf32>
    %12 = tpu.iota {dimensions = array<i32: 1>} : vector<4x256xi32>
    %c4_i32 = arith.constant 4 : i32
    %13 = vector.broadcast %c4_i32 : i32 to vector<4x256xi32>
    %14 = arith.shrsi %12, %13 : vector<4x256xi32>
    %c15_i32 = arith.constant 15 : i32
    %15 = vector.broadcast %c15_i32 : i32 to vector<4x256xi32>
    %16 = arith.andi %12, %15 : vector<4x256xi32>
    %c17_i32 = arith.constant 17 : i32
    %17 = tpu.dynamic_rotate %1 by %c17_i32 dim 1 : vector<4x256xf32>, i32 -> vector<4x256xf32>
    %c239_i32 = arith.constant 239 : i32
    %18 = tpu.dynamic_rotate %1 by %c239_i32 dim 1 : vector<4x256xf32>, i32 -> vector<4x256xf32>
    %19 = arith.select %11, %17, %18 : vector<4x256xi1>, vector<4x256xf32>
    %c1_i32_3 = arith.constant 1 : i32
    %20 = vector.broadcast %c1_i32_3 : i32 to vector<4x256xi32>
    %21 = arith.cmpi sge, %14, %20 : vector<4x256xi32>
    %c1_i32_4 = arith.constant 1 : i32
    %22 = vector.broadcast %c1_i32_4 : i32 to vector<4x256xi32>
    %23 = arith.cmpi sge, %16, %22 : vector<4x256xi32>
    %24 = arith.andi %21, %23 : vector<4x256xi1>
    %cst_5 = arith.constant 0.000000e+00 : f32
    %25 = vector.broadcast %cst_5 : f32 to vector<4x256xf32>
    %26 = arith.select %24, %19, %25 : vector<4x256xi1>, vector<4x256xf32>
    %c0_6 = arith.constant 0 : index
    %c0_7 = arith.constant 0 : index
    %c0_8 = arith.constant 0 : index
    %27 = vector.load %arg2[%c0_6, %c0_7, %c0_8] : memref<9x8x4xf32, #tpu.memory_space<vmem>>, vector<1x8x4xf32>
    %28 = vector.shape_cast %27 : vector<1x8x4xf32> to vector<8x4xf32>
    %cst_9 = arith.constant dense<0.000000e+00> : vector<8x256xf32>
    %29 = tpu.matmul %28, %26, %cst_9 {dimension_numbers = #tpu.dot_dimension_numbers<[1], [0], [0], [1], [0, 0, 1, 1], [], []>} : vector<8x4xf32>, vector<4x256xf32>, vector<8x256xf32> -> vector<8x256xf32>
    %c16_i32 = arith.constant 16 : i32
    %30 = tpu.dynamic_rotate %1 by %c16_i32 dim 1 : vector<4x256xf32>, i32 -> vector<4x256xf32>
    %c240_i32 = arith.constant 240 : i32
    %31 = tpu.dynamic_rotate %1 by %c240_i32 dim 1 : vector<4x256xf32>, i32 -> vector<4x256xf32>
    %32 = arith.select %11, %30, %31 : vector<4x256xi1>, vector<4x256xf32>
    %c1_i32_10 = arith.constant 1 : i32
    %33 = vector.broadcast %c1_i32_10 : i32 to vector<4x256xi32>
    %34 = arith.cmpi sge, %14, %33 : vector<4x256xi32>
    %cst_11 = arith.constant 0.000000e+00 : f32
    %35 = vector.broadcast %cst_11 : f32 to vector<4x256xf32>
    %36 = arith.select %34, %32, %35 : vector<4x256xi1>, vector<4x256xf32>
    %c1 = arith.constant 1 : index
    %c0_12 = arith.constant 0 : index
    %c0_13 = arith.constant 0 : index
    %37 = vector.load %arg2[%c1, %c0_12, %c0_13] : memref<9x8x4xf32, #tpu.memory_space<vmem>>, vector<1x8x4xf32>
    %38 = vector.shape_cast %37 : vector<1x8x4xf32> to vector<8x4xf32>
    %cst_14 = arith.constant dense<0.000000e+00> : vector<8x256xf32>
    %39 = tpu.matmul %38, %36, %cst_14 {dimension_numbers = #tpu.dot_dimension_numbers<[1], [0], [0], [1], [0, 0, 1, 1], [], []>} : vector<8x4xf32>, vector<4x256xf32>, vector<8x256xf32> -> vector<8x256xf32>
    %40 = arith.addf %29, %39 : vector<8x256xf32>
    %c15_i32_15 = arith.constant 15 : i32
    %41 = tpu.dynamic_rotate %1 by %c15_i32_15 dim 1 : vector<4x256xf32>, i32 -> vector<4x256xf32>
    %c241_i32 = arith.constant 241 : i32
    %42 = tpu.dynamic_rotate %1 by %c241_i32 dim 1 : vector<4x256xf32>, i32 -> vector<4x256xf32>
    %43 = arith.select %11, %41, %42 : vector<4x256xi1>, vector<4x256xf32>
    %c1_i32_16 = arith.constant 1 : i32
    %44 = vector.broadcast %c1_i32_16 : i32 to vector<4x256xi32>
    %45 = arith.cmpi sge, %14, %44 : vector<4x256xi32>
    %c14_i32 = arith.constant 14 : i32
    %46 = vector.broadcast %c14_i32 : i32 to vector<4x256xi32>
    %47 = arith.cmpi sle, %16, %46 : vector<4x256xi32>
    %48 = arith.andi %45, %47 : vector<4x256xi1>
    %cst_17 = arith.constant 0.000000e+00 : f32
    %49 = vector.broadcast %cst_17 : f32 to vector<4x256xf32>
    %50 = arith.select %48, %43, %49 : vector<4x256xi1>, vector<4x256xf32>
    %c2 = arith.constant 2 : index
    %c0_18 = arith.constant 0 : index
    %c0_19 = arith.constant 0 : index
    %51 = vector.load %arg2[%c2, %c0_18, %c0_19] : memref<9x8x4xf32, #tpu.memory_space<vmem>>, vector<1x8x4xf32>
    %52 = vector.shape_cast %51 : vector<1x8x4xf32> to vector<8x4xf32>
    %cst_20 = arith.constant dense<0.000000e+00> : vector<8x256xf32>
    %53 = tpu.matmul %52, %50, %cst_20 {dimension_numbers = #tpu.dot_dimension_numbers<[1], [0], [0], [1], [0, 0, 1, 1], [], []>} : vector<8x4xf32>, vector<4x256xf32>, vector<8x256xf32> -> vector<8x256xf32>
    %54 = arith.addf %40, %53 : vector<8x256xf32>
    %c1_i32_21 = arith.constant 1 : i32
    %55 = tpu.dynamic_rotate %1 by %c1_i32_21 dim 1 : vector<4x256xf32>, i32 -> vector<4x256xf32>
    %c255_i32 = arith.constant 255 : i32
    %56 = tpu.dynamic_rotate %1 by %c255_i32 dim 1 : vector<4x256xf32>, i32 -> vector<4x256xf32>
    %57 = arith.select %11, %55, %56 : vector<4x256xi1>, vector<4x256xf32>
    %c1_i32_22 = arith.constant 1 : i32
    %58 = vector.broadcast %c1_i32_22 : i32 to vector<4x256xi32>
    %59 = arith.cmpi sge, %16, %58 : vector<4x256xi32>
    %cst_23 = arith.constant 0.000000e+00 : f32
    %60 = vector.broadcast %cst_23 : f32 to vector<4x256xf32>
    %61 = arith.select %59, %57, %60 : vector<4x256xi1>, vector<4x256xf32>
    %c3 = arith.constant 3 : index
    %c0_24 = arith.constant 0 : index
    %c0_25 = arith.constant 0 : index
    %62 = vector.load %arg2[%c3, %c0_24, %c0_25] : memref<9x8x4xf32, #tpu.memory_space<vmem>>, vector<1x8x4xf32>
    %63 = vector.shape_cast %62 : vector<1x8x4xf32> to vector<8x4xf32>
    %cst_26 = arith.constant dense<0.000000e+00> : vector<8x256xf32>
    %64 = tpu.matmul %63, %61, %cst_26 {dimension_numbers = #tpu.dot_dimension_numbers<[1], [0], [0], [1], [0, 0, 1, 1], [], []>} : vector<8x4xf32>, vector<4x256xf32>, vector<8x256xf32> -> vector<8x256xf32>
    %65 = arith.addf %54, %64 : vector<8x256xf32>
    %c4 = arith.constant 4 : index
    %c0_27 = arith.constant 0 : index
    %c0_28 = arith.constant 0 : index
    %66 = vector.load %arg2[%c4, %c0_27, %c0_28] : memref<9x8x4xf32, #tpu.memory_space<vmem>>, vector<1x8x4xf32>
    %67 = vector.shape_cast %66 : vector<1x8x4xf32> to vector<8x4xf32>
    %cst_29 = arith.constant dense<0.000000e+00> : vector<8x256xf32>
    %68 = tpu.matmul %67, %1, %cst_29 {dimension_numbers = #tpu.dot_dimension_numbers<[1], [0], [0], [1], [0, 0, 1, 1], [], []>} : vector<8x4xf32>, vector<4x256xf32>, vector<8x256xf32> -> vector<8x256xf32>
    %69 = arith.addf %65, %68 : vector<8x256xf32>
    %c255_i32_30 = arith.constant 255 : i32
    %70 = tpu.dynamic_rotate %1 by %c255_i32_30 dim 1 : vector<4x256xf32>, i32 -> vector<4x256xf32>
    %c1_i32_31 = arith.constant 1 : i32
    %71 = tpu.dynamic_rotate %1 by %c1_i32_31 dim 1 : vector<4x256xf32>, i32 -> vector<4x256xf32>
    %72 = arith.select %11, %70, %71 : vector<4x256xi1>, vector<4x256xf32>
    %c14_i32_32 = arith.constant 14 : i32
    %73 = vector.broadcast %c14_i32_32 : i32 to vector<4x256xi32>
    %74 = arith.cmpi sle, %16, %73 : vector<4x256xi32>
    %cst_33 = arith.constant 0.000000e+00 : f32
    %75 = vector.broadcast %cst_33 : f32 to vector<4x256xf32>
    %76 = arith.select %74, %72, %75 : vector<4x256xi1>, vector<4x256xf32>
    %c5 = arith.constant 5 : index
    %c0_34 = arith.constant 0 : index
    %c0_35 = arith.constant 0 : index
    %77 = vector.load %arg2[%c5, %c0_34, %c0_35] : memref<9x8x4xf32, #tpu.memory_space<vmem>>, vector<1x8x4xf32>
    %78 = vector.shape_cast %77 : vector<1x8x4xf32> to vector<8x4xf32>
    %cst_36 = arith.constant dense<0.000000e+00> : vector<8x256xf32>
    %79 = tpu.matmul %78, %76, %cst_36 {dimension_numbers = #tpu.dot_dimension_numbers<[1], [0], [0], [1], [0, 0, 1, 1], [], []>} : vector<8x4xf32>, vector<4x256xf32>, vector<8x256xf32> -> vector<8x256xf32>
    %80 = arith.addf %69, %79 : vector<8x256xf32>
    %c241_i32_37 = arith.constant 241 : i32
    %81 = tpu.dynamic_rotate %1 by %c241_i32_37 dim 1 : vector<4x256xf32>, i32 -> vector<4x256xf32>
    %c15_i32_38 = arith.constant 15 : i32
    %82 = tpu.dynamic_rotate %1 by %c15_i32_38 dim 1 : vector<4x256xf32>, i32 -> vector<4x256xf32>
    %83 = arith.select %11, %81, %82 : vector<4x256xi1>, vector<4x256xf32>
    %c14_i32_39 = arith.constant 14 : i32
    %84 = vector.broadcast %c14_i32_39 : i32 to vector<4x256xi32>
    %85 = arith.cmpi sle, %14, %84 : vector<4x256xi32>
    %c1_i32_40 = arith.constant 1 : i32
    %86 = vector.broadcast %c1_i32_40 : i32 to vector<4x256xi32>
    %87 = arith.cmpi sge, %16, %86 : vector<4x256xi32>
    %88 = arith.andi %85, %87 : vector<4x256xi1>
    %cst_41 = arith.constant 0.000000e+00 : f32
    %89 = vector.broadcast %cst_41 : f32 to vector<4x256xf32>
    %90 = arith.select %88, %83, %89 : vector<4x256xi1>, vector<4x256xf32>
    %c6 = arith.constant 6 : index
    %c0_42 = arith.constant 0 : index
    %c0_43 = arith.constant 0 : index
    %91 = vector.load %arg2[%c6, %c0_42, %c0_43] : memref<9x8x4xf32, #tpu.memory_space<vmem>>, vector<1x8x4xf32>
    %92 = vector.shape_cast %91 : vector<1x8x4xf32> to vector<8x4xf32>
    %cst_44 = arith.constant dense<0.000000e+00> : vector<8x256xf32>
    %93 = tpu.matmul %92, %90, %cst_44 {dimension_numbers = #tpu.dot_dimension_numbers<[1], [0], [0], [1], [0, 0, 1, 1], [], []>} : vector<8x4xf32>, vector<4x256xf32>, vector<8x256xf32> -> vector<8x256xf32>
    %94 = arith.addf %80, %93 : vector<8x256xf32>
    %c240_i32_45 = arith.constant 240 : i32
    %95 = tpu.dynamic_rotate %1 by %c240_i32_45 dim 1 : vector<4x256xf32>, i32 -> vector<4x256xf32>
    %c16_i32_46 = arith.constant 16 : i32
    %96 = tpu.dynamic_rotate %1 by %c16_i32_46 dim 1 : vector<4x256xf32>, i32 -> vector<4x256xf32>
    %97 = arith.select %11, %95, %96 : vector<4x256xi1>, vector<4x256xf32>
    %c14_i32_47 = arith.constant 14 : i32
    %98 = vector.broadcast %c14_i32_47 : i32 to vector<4x256xi32>
    %99 = arith.cmpi sle, %14, %98 : vector<4x256xi32>
    %cst_48 = arith.constant 0.000000e+00 : f32
    %100 = vector.broadcast %cst_48 : f32 to vector<4x256xf32>
    %101 = arith.select %99, %97, %100 : vector<4x256xi1>, vector<4x256xf32>
    %c7 = arith.constant 7 : index
    %c0_49 = arith.constant 0 : index
    %c0_50 = arith.constant 0 : index
    %102 = vector.load %arg2[%c7, %c0_49, %c0_50] : memref<9x8x4xf32, #tpu.memory_space<vmem>>, vector<1x8x4xf32>
    %103 = vector.shape_cast %102 : vector<1x8x4xf32> to vector<8x4xf32>
    %cst_51 = arith.constant dense<0.000000e+00> : vector<8x256xf32>
    %104 = tpu.matmul %103, %101, %cst_51 {dimension_numbers = #tpu.dot_dimension_numbers<[1], [0], [0], [1], [0, 0, 1, 1], [], []>} : vector<8x4xf32>, vector<4x256xf32>, vector<8x256xf32> -> vector<8x256xf32>
    %105 = arith.addf %94, %104 : vector<8x256xf32>
    %c239_i32_52 = arith.constant 239 : i32
    %106 = tpu.dynamic_rotate %1 by %c239_i32_52 dim 1 : vector<4x256xf32>, i32 -> vector<4x256xf32>
    %c17_i32_53 = arith.constant 17 : i32
    %107 = tpu.dynamic_rotate %1 by %c17_i32_53 dim 1 : vector<4x256xf32>, i32 -> vector<4x256xf32>
    %108 = arith.select %11, %106, %107 : vector<4x256xi1>, vector<4x256xf32>
    %c14_i32_54 = arith.constant 14 : i32
    %109 = vector.broadcast %c14_i32_54 : i32 to vector<4x256xi32>
    %110 = arith.cmpi sle, %14, %109 : vector<4x256xi32>
    %c14_i32_55 = arith.constant 14 : i32
    %111 = vector.broadcast %c14_i32_55 : i32 to vector<4x256xi32>
    %112 = arith.cmpi sle, %16, %111 : vector<4x256xi32>
    %113 = arith.andi %110, %112 : vector<4x256xi1>
    %cst_56 = arith.constant 0.000000e+00 : f32
    %114 = vector.broadcast %cst_56 : f32 to vector<4x256xf32>
    %115 = arith.select %113, %108, %114 : vector<4x256xi1>, vector<4x256xf32>
    %c8 = arith.constant 8 : index
    %c0_57 = arith.constant 0 : index
    %c0_58 = arith.constant 0 : index
    %116 = vector.load %arg2[%c8, %c0_57, %c0_58] : memref<9x8x4xf32, #tpu.memory_space<vmem>>, vector<1x8x4xf32>
    %117 = vector.shape_cast %116 : vector<1x8x4xf32> to vector<8x4xf32>
    %cst_59 = arith.constant dense<0.000000e+00> : vector<8x256xf32>
    %118 = tpu.matmul %117, %115, %cst_59 {dimension_numbers = #tpu.dot_dimension_numbers<[1], [0], [0], [1], [0, 0, 1, 1], [], []>} : vector<8x4xf32>, vector<4x256xf32>, vector<8x256xf32> -> vector<8x256xf32>
    %119 = arith.addf %105, %118 : vector<8x256xf32>
    %c0_60 = arith.constant 0 : index
    %c0_61 = arith.constant 0 : index
    %120 = vector.load %arg3[%c0_60, %c0_61] : memref<8x1xf32, #tpu.memory_space<vmem>>, vector<8x1xf32>
    %121 = vector.broadcast %120 : vector<8x1xf32> to vector<8x256xf32>
    %122 = arith.addf %119, %121 : vector<8x256xf32>
    %cst_62 = arith.constant 0.000000e+00 : f32
    %123 = vector.broadcast %cst_62 : f32 to vector<8x256xf32>
    %124 = arith.maximumf %122, %123 : vector<8x256xf32>
    %125 = tpu.iota {dimensions = array<i32: 1>} : vector<8x256xi32>
    %126 = arith.sitofp %125 : vector<8x256xi32> to vector<8x256xf32>
    %c1_i32_63 = arith.constant 1 : i32
    %127 = tpu.dynamic_rotate %126 by %c1_i32_63 dim 1 : vector<8x256xf32>, i32 -> vector<8x256xf32>
    %c0_i32_64 = arith.constant 0 : i32
    %128 = vector.broadcast %c0_i32_64 : i32 to vector<8x256xi32>
    %129 = arith.cmpi eq, %125, %128 : vector<8x256xi32>
    %cst_65 = arith.constant 1.000000e+00 : f32
    %130 = vector.broadcast %cst_65 : f32 to vector<8x256xf32>
    %131 = arith.subf %126, %130 : vector<8x256xf32>
    %cst_66 = arith.constant 2.550000e+02 : f32
    %132 = vector.broadcast %cst_66 : f32 to vector<8x256xf32>
    %133 = arith.select %129, %132, %131 : vector<8x256xi1>, vector<8x256xf32>
    %134 = arith.cmpf oeq, %127, %133 : vector<8x256xf32>
    %c255_i32_67 = arith.constant 255 : i32
    %135 = tpu.dynamic_rotate %124 by %c255_i32_67 dim 1 : vector<8x256xf32>, i32 -> vector<8x256xf32>
    %c1_i32_68 = arith.constant 1 : i32
    %136 = tpu.dynamic_rotate %124 by %c1_i32_68 dim 1 : vector<8x256xf32>, i32 -> vector<8x256xf32>
    %137 = arith.select %134, %135, %136 : vector<8x256xi1>, vector<8x256xf32>
    %138 = arith.maximumf %124, %137 : vector<8x256xf32>
    %c240_i32_69 = arith.constant 240 : i32
    %139 = tpu.dynamic_rotate %124 by %c240_i32_69 dim 1 : vector<8x256xf32>, i32 -> vector<8x256xf32>
    %c16_i32_70 = arith.constant 16 : i32
    %140 = tpu.dynamic_rotate %124 by %c16_i32_70 dim 1 : vector<8x256xf32>, i32 -> vector<8x256xf32>
    %141 = arith.select %134, %139, %140 : vector<8x256xi1>, vector<8x256xf32>
    %142 = arith.maximumf %138, %141 : vector<8x256xf32>
    %c239_i32_71 = arith.constant 239 : i32
    %143 = tpu.dynamic_rotate %124 by %c239_i32_71 dim 1 : vector<8x256xf32>, i32 -> vector<8x256xf32>
    %c17_i32_72 = arith.constant 17 : i32
    %144 = tpu.dynamic_rotate %124 by %c17_i32_72 dim 1 : vector<8x256xf32>, i32 -> vector<8x256xf32>
    %145 = arith.select %134, %143, %144 : vector<8x256xi1>, vector<8x256xf32>
    %146 = arith.maximumf %142, %145 : vector<8x256xf32>
    %c0_73 = arith.constant 0 : index
    %c0_74 = arith.constant 0 : index
    %147 = vector.load %arg6[%c0_73, %c0_74] : memref<256x64xf32, #tpu.memory_space<vmem>>, vector<256x64xf32>
    %cst_75 = arith.constant dense<0.000000e+00> : vector<8x64xf32>
    %148 = tpu.matmul %146, %147, %cst_75 {dimension_numbers = #tpu.dot_dimension_numbers<[1], [0], [0], [1], [0, 0, 1, 1], [], []>} : vector<8x256xf32>, vector<256x64xf32>, vector<8x64xf32> -> vector<8x64xf32>
    %149 = tpu.iota {dimensions = array<i32: 1>} : vector<8x64xi32>
    %150 = arith.sitofp %149 : vector<8x64xi32> to vector<8x64xf32>
    %c1_i32_76 = arith.constant 1 : i32
    %151 = tpu.dynamic_rotate %150 by %c1_i32_76 dim 1 : vector<8x64xf32>, i32 -> vector<8x64xf32>
    %c0_i32_77 = arith.constant 0 : i32
    %152 = vector.broadcast %c0_i32_77 : i32 to vector<8x64xi32>
    %153 = arith.cmpi eq, %149, %152 : vector<8x64xi32>
    %cst_78 = arith.constant 1.000000e+00 : f32
    %154 = vector.broadcast %cst_78 : f32 to vector<8x64xf32>
    %155 = arith.subf %150, %154 : vector<8x64xf32>
    %cst_79 = arith.constant 6.300000e+01 : f32
    %156 = vector.broadcast %cst_79 : f32 to vector<8x64xf32>
    %157 = arith.select %153, %156, %155 : vector<8x64xi1>, vector<8x64xf32>
    %158 = arith.cmpf oeq, %151, %157 : vector<8x64xf32>
    %159 = tpu.iota {dimensions = array<i32: 1>} : vector<8x64xi32>
    %c3_i32 = arith.constant 3 : i32
    %160 = vector.broadcast %c3_i32 : i32 to vector<8x64xi32>
    %161 = arith.shrsi %159, %160 : vector<8x64xi32>
    %c7_i32 = arith.constant 7 : i32
    %162 = vector.broadcast %c7_i32 : i32 to vector<8x64xi32>
    %163 = arith.andi %159, %162 : vector<8x64xi32>
    %c9_i32 = arith.constant 9 : i32
    %164 = tpu.dynamic_rotate %148 by %c9_i32 dim 1 : vector<8x64xf32>, i32 -> vector<8x64xf32>
    %c55_i32 = arith.constant 55 : i32
    %165 = tpu.dynamic_rotate %148 by %c55_i32 dim 1 : vector<8x64xf32>, i32 -> vector<8x64xf32>
    %166 = arith.select %158, %164, %165 : vector<8x64xi1>, vector<8x64xf32>
    %c1_i32_80 = arith.constant 1 : i32
    %167 = vector.broadcast %c1_i32_80 : i32 to vector<8x64xi32>
    %168 = arith.cmpi sge, %161, %167 : vector<8x64xi32>
    %c1_i32_81 = arith.constant 1 : i32
    %169 = vector.broadcast %c1_i32_81 : i32 to vector<8x64xi32>
    %170 = arith.cmpi sge, %163, %169 : vector<8x64xi32>
    %171 = arith.andi %168, %170 : vector<8x64xi1>
    %cst_82 = arith.constant 0.000000e+00 : f32
    %172 = vector.broadcast %cst_82 : f32 to vector<8x64xf32>
    %173 = arith.select %171, %166, %172 : vector<8x64xi1>, vector<8x64xf32>
    %c0_83 = arith.constant 0 : index
    %c0_84 = arith.constant 0 : index
    %c0_85 = arith.constant 0 : index
    %174 = vector.load %arg4[%c0_83, %c0_84, %c0_85] : memref<9x16x8xf32, #tpu.memory_space<vmem>>, vector<1x16x8xf32>
    %175 = vector.shape_cast %174 : vector<1x16x8xf32> to vector<16x8xf32>
    %cst_86 = arith.constant dense<0.000000e+00> : vector<16x64xf32>
    %176 = tpu.matmul %175, %173, %cst_86 {dimension_numbers = #tpu.dot_dimension_numbers<[1], [0], [0], [1], [0, 0, 1, 1], [], []>} : vector<16x8xf32>, vector<8x64xf32>, vector<16x64xf32> -> vector<16x64xf32>
    %c8_i32 = arith.constant 8 : i32
    %177 = tpu.dynamic_rotate %148 by %c8_i32 dim 1 : vector<8x64xf32>, i32 -> vector<8x64xf32>
    %c56_i32 = arith.constant 56 : i32
    %178 = tpu.dynamic_rotate %148 by %c56_i32 dim 1 : vector<8x64xf32>, i32 -> vector<8x64xf32>
    %179 = arith.select %158, %177, %178 : vector<8x64xi1>, vector<8x64xf32>
    %c1_i32_87 = arith.constant 1 : i32
    %180 = vector.broadcast %c1_i32_87 : i32 to vector<8x64xi32>
    %181 = arith.cmpi sge, %161, %180 : vector<8x64xi32>
    %cst_88 = arith.constant 0.000000e+00 : f32
    %182 = vector.broadcast %cst_88 : f32 to vector<8x64xf32>
    %183 = arith.select %181, %179, %182 : vector<8x64xi1>, vector<8x64xf32>
    %c1_89 = arith.constant 1 : index
    %c0_90 = arith.constant 0 : index
    %c0_91 = arith.constant 0 : index
    %184 = vector.load %arg4[%c1_89, %c0_90, %c0_91] : memref<9x16x8xf32, #tpu.memory_space<vmem>>, vector<1x16x8xf32>
    %185 = vector.shape_cast %184 : vector<1x16x8xf32> to vector<16x8xf32>
    %cst_92 = arith.constant dense<0.000000e+00> : vector<16x64xf32>
    %186 = tpu.matmul %185, %183, %cst_92 {dimension_numbers = #tpu.dot_dimension_numbers<[1], [0], [0], [1], [0, 0, 1, 1], [], []>} : vector<16x8xf32>, vector<8x64xf32>, vector<16x64xf32> -> vector<16x64xf32>
    %187 = arith.addf %176, %186 : vector<16x64xf32>
    %c7_i32_93 = arith.constant 7 : i32
    %188 = tpu.dynamic_rotate %148 by %c7_i32_93 dim 1 : vector<8x64xf32>, i32 -> vector<8x64xf32>
    %c57_i32 = arith.constant 57 : i32
    %189 = tpu.dynamic_rotate %148 by %c57_i32 dim 1 : vector<8x64xf32>, i32 -> vector<8x64xf32>
    %190 = arith.select %158, %188, %189 : vector<8x64xi1>, vector<8x64xf32>
    %c1_i32_94 = arith.constant 1 : i32
    %191 = vector.broadcast %c1_i32_94 : i32 to vector<8x64xi32>
    %192 = arith.cmpi sge, %161, %191 : vector<8x64xi32>
    %c6_i32 = arith.constant 6 : i32
    %193 = vector.broadcast %c6_i32 : i32 to vector<8x64xi32>
    %194 = arith.cmpi sle, %163, %193 : vector<8x64xi32>
    %195 = arith.andi %192, %194 : vector<8x64xi1>
    %cst_95 = arith.constant 0.000000e+00 : f32
    %196 = vector.broadcast %cst_95 : f32 to vector<8x64xf32>
    %197 = arith.select %195, %190, %196 : vector<8x64xi1>, vector<8x64xf32>
    %c2_96 = arith.constant 2 : index
    %c0_97 = arith.constant 0 : index
    %c0_98 = arith.constant 0 : index
    %198 = vector.load %arg4[%c2_96, %c0_97, %c0_98] : memref<9x16x8xf32, #tpu.memory_space<vmem>>, vector<1x16x8xf32>
    %199 = vector.shape_cast %198 : vector<1x16x8xf32> to vector<16x8xf32>
    %cst_99 = arith.constant dense<0.000000e+00> : vector<16x64xf32>
    %200 = tpu.matmul %199, %197, %cst_99 {dimension_numbers = #tpu.dot_dimension_numbers<[1], [0], [0], [1], [0, 0, 1, 1], [], []>} : vector<16x8xf32>, vector<8x64xf32>, vector<16x64xf32> -> vector<16x64xf32>
    %201 = arith.addf %187, %200 : vector<16x64xf32>
    %c1_i32_100 = arith.constant 1 : i32
    %202 = tpu.dynamic_rotate %148 by %c1_i32_100 dim 1 : vector<8x64xf32>, i32 -> vector<8x64xf32>
    %c63_i32 = arith.constant 63 : i32
    %203 = tpu.dynamic_rotate %148 by %c63_i32 dim 1 : vector<8x64xf32>, i32 -> vector<8x64xf32>
    %204 = arith.select %158, %202, %203 : vector<8x64xi1>, vector<8x64xf32>
    %c1_i32_101 = arith.constant 1 : i32
    %205 = vector.broadcast %c1_i32_101 : i32 to vector<8x64xi32>
    %206 = arith.cmpi sge, %163, %205 : vector<8x64xi32>
    %cst_102 = arith.constant 0.000000e+00 : f32
    %207 = vector.broadcast %cst_102 : f32 to vector<8x64xf32>
    %208 = arith.select %206, %204, %207 : vector<8x64xi1>, vector<8x64xf32>
    %c3_103 = arith.constant 3 : index
    %c0_104 = arith.constant 0 : index
    %c0_105 = arith.constant 0 : index
    %209 = vector.load %arg4[%c3_103, %c0_104, %c0_105] : memref<9x16x8xf32, #tpu.memory_space<vmem>>, vector<1x16x8xf32>
    %210 = vector.shape_cast %209 : vector<1x16x8xf32> to vector<16x8xf32>
    %cst_106 = arith.constant dense<0.000000e+00> : vector<16x64xf32>
    %211 = tpu.matmul %210, %208, %cst_106 {dimension_numbers = #tpu.dot_dimension_numbers<[1], [0], [0], [1], [0, 0, 1, 1], [], []>} : vector<16x8xf32>, vector<8x64xf32>, vector<16x64xf32> -> vector<16x64xf32>
    %212 = arith.addf %201, %211 : vector<16x64xf32>
    %c4_107 = arith.constant 4 : index
    %c0_108 = arith.constant 0 : index
    %c0_109 = arith.constant 0 : index
    %213 = vector.load %arg4[%c4_107, %c0_108, %c0_109] : memref<9x16x8xf32, #tpu.memory_space<vmem>>, vector<1x16x8xf32>
    %214 = vector.shape_cast %213 : vector<1x16x8xf32> to vector<16x8xf32>
    %cst_110 = arith.constant dense<0.000000e+00> : vector<16x64xf32>
    %215 = tpu.matmul %214, %148, %cst_110 {dimension_numbers = #tpu.dot_dimension_numbers<[1], [0], [0], [1], [0, 0, 1, 1], [], []>} : vector<16x8xf32>, vector<8x64xf32>, vector<16x64xf32> -> vector<16x64xf32>
    %216 = arith.addf %212, %215 : vector<16x64xf32>
    %c63_i32_111 = arith.constant 63 : i32
    %217 = tpu.dynamic_rotate %148 by %c63_i32_111 dim 1 : vector<8x64xf32>, i32 -> vector<8x64xf32>
    %c1_i32_112 = arith.constant 1 : i32
    %218 = tpu.dynamic_rotate %148 by %c1_i32_112 dim 1 : vector<8x64xf32>, i32 -> vector<8x64xf32>
    %219 = arith.select %158, %217, %218 : vector<8x64xi1>, vector<8x64xf32>
    %c6_i32_113 = arith.constant 6 : i32
    %220 = vector.broadcast %c6_i32_113 : i32 to vector<8x64xi32>
    %221 = arith.cmpi sle, %163, %220 : vector<8x64xi32>
    %cst_114 = arith.constant 0.000000e+00 : f32
    %222 = vector.broadcast %cst_114 : f32 to vector<8x64xf32>
    %223 = arith.select %221, %219, %222 : vector<8x64xi1>, vector<8x64xf32>
    %c5_115 = arith.constant 5 : index
    %c0_116 = arith.constant 0 : index
    %c0_117 = arith.constant 0 : index
    %224 = vector.load %arg4[%c5_115, %c0_116, %c0_117] : memref<9x16x8xf32, #tpu.memory_space<vmem>>, vector<1x16x8xf32>
    %225 = vector.shape_cast %224 : vector<1x16x8xf32> to vector<16x8xf32>
    %cst_118 = arith.constant dense<0.000000e+00> : vector<16x64xf32>
    %226 = tpu.matmul %225, %223, %cst_118 {dimension_numbers = #tpu.dot_dimension_numbers<[1], [0], [0], [1], [0, 0, 1, 1], [], []>} : vector<16x8xf32>, vector<8x64xf32>, vector<16x64xf32> -> vector<16x64xf32>
    %227 = arith.addf %216, %226 : vector<16x64xf32>
    %c57_i32_119 = arith.constant 57 : i32
    %228 = tpu.dynamic_rotate %148 by %c57_i32_119 dim 1 : vector<8x64xf32>, i32 -> vector<8x64xf32>
    %c7_i32_120 = arith.constant 7 : i32
    %229 = tpu.dynamic_rotate %148 by %c7_i32_120 dim 1 : vector<8x64xf32>, i32 -> vector<8x64xf32>
    %230 = arith.select %158, %228, %229 : vector<8x64xi1>, vector<8x64xf32>
    %c6_i32_121 = arith.constant 6 : i32
    %231 = vector.broadcast %c6_i32_121 : i32 to vector<8x64xi32>
    %232 = arith.cmpi sle, %161, %231 : vector<8x64xi32>
    %c1_i32_122 = arith.constant 1 : i32
    %233 = vector.broadcast %c1_i32_122 : i32 to vector<8x64xi32>
    %234 = arith.cmpi sge, %163, %233 : vector<8x64xi32>
    %235 = arith.andi %232, %234 : vector<8x64xi1>
    %cst_123 = arith.constant 0.000000e+00 : f32
    %236 = vector.broadcast %cst_123 : f32 to vector<8x64xf32>
    %237 = arith.select %235, %230, %236 : vector<8x64xi1>, vector<8x64xf32>
    %c6_124 = arith.constant 6 : index
    %c0_125 = arith.constant 0 : index
    %c0_126 = arith.constant 0 : index
    %238 = vector.load %arg4[%c6_124, %c0_125, %c0_126] : memref<9x16x8xf32, #tpu.memory_space<vmem>>, vector<1x16x8xf32>
    %239 = vector.shape_cast %238 : vector<1x16x8xf32> to vector<16x8xf32>
    %cst_127 = arith.constant dense<0.000000e+00> : vector<16x64xf32>
    %240 = tpu.matmul %239, %237, %cst_127 {dimension_numbers = #tpu.dot_dimension_numbers<[1], [0], [0], [1], [0, 0, 1, 1], [], []>} : vector<16x8xf32>, vector<8x64xf32>, vector<16x64xf32> -> vector<16x64xf32>
    %241 = arith.addf %227, %240 : vector<16x64xf32>
    %c56_i32_128 = arith.constant 56 : i32
    %242 = tpu.dynamic_rotate %148 by %c56_i32_128 dim 1 : vector<8x64xf32>, i32 -> vector<8x64xf32>
    %c8_i32_129 = arith.constant 8 : i32
    %243 = tpu.dynamic_rotate %148 by %c8_i32_129 dim 1 : vector<8x64xf32>, i32 -> vector<8x64xf32>
    %244 = arith.select %158, %242, %243 : vector<8x64xi1>, vector<8x64xf32>
    %c6_i32_130 = arith.constant 6 : i32
    %245 = vector.broadcast %c6_i32_130 : i32 to vector<8x64xi32>
    %246 = arith.cmpi sle, %161, %245 : vector<8x64xi32>
    %cst_131 = arith.constant 0.000000e+00 : f32
    %247 = vector.broadcast %cst_131 : f32 to vector<8x64xf32>
    %248 = arith.select %246, %244, %247 : vector<8x64xi1>, vector<8x64xf32>
    %c7_132 = arith.constant 7 : index
    %c0_133 = arith.constant 0 : index
    %c0_134 = arith.constant 0 : index
    %249 = vector.load %arg4[%c7_132, %c0_133, %c0_134] : memref<9x16x8xf32, #tpu.memory_space<vmem>>, vector<1x16x8xf32>
    %250 = vector.shape_cast %249 : vector<1x16x8xf32> to vector<16x8xf32>
    %cst_135 = arith.constant dense<0.000000e+00> : vector<16x64xf32>
    %251 = tpu.matmul %250, %248, %cst_135 {dimension_numbers = #tpu.dot_dimension_numbers<[1], [0], [0], [1], [0, 0, 1, 1], [], []>} : vector<16x8xf32>, vector<8x64xf32>, vector<16x64xf32> -> vector<16x64xf32>
    %252 = arith.addf %241, %251 : vector<16x64xf32>
    %c55_i32_136 = arith.constant 55 : i32
    %253 = tpu.dynamic_rotate %148 by %c55_i32_136 dim 1 : vector<8x64xf32>, i32 -> vector<8x64xf32>
    %c9_i32_137 = arith.constant 9 : i32
    %254 = tpu.dynamic_rotate %148 by %c9_i32_137 dim 1 : vector<8x64xf32>, i32 -> vector<8x64xf32>
    %255 = arith.select %158, %253, %254 : vector<8x64xi1>, vector<8x64xf32>
    %c6_i32_138 = arith.constant 6 : i32
    %256 = vector.broadcast %c6_i32_138 : i32 to vector<8x64xi32>
    %257 = arith.cmpi sle, %161, %256 : vector<8x64xi32>
    %c6_i32_139 = arith.constant 6 : i32
    %258 = vector.broadcast %c6_i32_139 : i32 to vector<8x64xi32>
    %259 = arith.cmpi sle, %163, %258 : vector<8x64xi32>
    %260 = arith.andi %257, %259 : vector<8x64xi1>
    %cst_140 = arith.constant 0.000000e+00 : f32
    %261 = vector.broadcast %cst_140 : f32 to vector<8x64xf32>
    %262 = arith.select %260, %255, %261 : vector<8x64xi1>, vector<8x64xf32>
    %c8_141 = arith.constant 8 : index
    %c0_142 = arith.constant 0 : index
    %c0_143 = arith.constant 0 : index
    %263 = vector.load %arg4[%c8_141, %c0_142, %c0_143] : memref<9x16x8xf32, #tpu.memory_space<vmem>>, vector<1x16x8xf32>
    %264 = vector.shape_cast %263 : vector<1x16x8xf32> to vector<16x8xf32>
    %cst_144 = arith.constant dense<0.000000e+00> : vector<16x64xf32>
    %265 = tpu.matmul %264, %262, %cst_144 {dimension_numbers = #tpu.dot_dimension_numbers<[1], [0], [0], [1], [0, 0, 1, 1], [], []>} : vector<16x8xf32>, vector<8x64xf32>, vector<16x64xf32> -> vector<16x64xf32>
    %266 = arith.addf %252, %265 : vector<16x64xf32>
    %c0_145 = arith.constant 0 : index
    %c0_146 = arith.constant 0 : index
    %267 = vector.load %arg5[%c0_145, %c0_146] : memref<16x1xf32, #tpu.memory_space<vmem>>, vector<16x1xf32>
    %268 = vector.broadcast %267 : vector<16x1xf32> to vector<16x64xf32>
    %269 = arith.addf %266, %268 : vector<16x64xf32>
    %cst_147 = arith.constant 0.000000e+00 : f32
    %270 = vector.broadcast %cst_147 : f32 to vector<16x64xf32>
    %271 = arith.maximumf %269, %270 : vector<16x64xf32>
    %272 = tpu.iota {dimensions = array<i32: 1>} : vector<16x64xi32>
    %273 = arith.sitofp %272 : vector<16x64xi32> to vector<16x64xf32>
    %c1_i32_148 = arith.constant 1 : i32
    %274 = tpu.dynamic_rotate %273 by %c1_i32_148 dim 1 : vector<16x64xf32>, i32 -> vector<16x64xf32>
    %c0_i32_149 = arith.constant 0 : i32
    %275 = vector.broadcast %c0_i32_149 : i32 to vector<16x64xi32>
    %276 = arith.cmpi eq, %272, %275 : vector<16x64xi32>
    %cst_150 = arith.constant 1.000000e+00 : f32
    %277 = vector.broadcast %cst_150 : f32 to vector<16x64xf32>
    %278 = arith.subf %273, %277 : vector<16x64xf32>
    %cst_151 = arith.constant 6.300000e+01 : f32
    %279 = vector.broadcast %cst_151 : f32 to vector<16x64xf32>
    %280 = arith.select %276, %279, %278 : vector<16x64xi1>, vector<16x64xf32>
    %281 = arith.cmpf oeq, %274, %280 : vector<16x64xf32>
    %c63_i32_152 = arith.constant 63 : i32
    %282 = tpu.dynamic_rotate %271 by %c63_i32_152 dim 1 : vector<16x64xf32>, i32 -> vector<16x64xf32>
    %c1_i32_153 = arith.constant 1 : i32
    %283 = tpu.dynamic_rotate %271 by %c1_i32_153 dim 1 : vector<16x64xf32>, i32 -> vector<16x64xf32>
    %284 = arith.select %281, %282, %283 : vector<16x64xi1>, vector<16x64xf32>
    %285 = arith.maximumf %271, %284 : vector<16x64xf32>
    %c56_i32_154 = arith.constant 56 : i32
    %286 = tpu.dynamic_rotate %271 by %c56_i32_154 dim 1 : vector<16x64xf32>, i32 -> vector<16x64xf32>
    %c8_i32_155 = arith.constant 8 : i32
    %287 = tpu.dynamic_rotate %271 by %c8_i32_155 dim 1 : vector<16x64xf32>, i32 -> vector<16x64xf32>
    %288 = arith.select %281, %286, %287 : vector<16x64xi1>, vector<16x64xf32>
    %289 = arith.maximumf %285, %288 : vector<16x64xf32>
    %c55_i32_156 = arith.constant 55 : i32
    %290 = tpu.dynamic_rotate %271 by %c55_i32_156 dim 1 : vector<16x64xf32>, i32 -> vector<16x64xf32>
    %c9_i32_157 = arith.constant 9 : i32
    %291 = tpu.dynamic_rotate %271 by %c9_i32_157 dim 1 : vector<16x64xf32>, i32 -> vector<16x64xf32>
    %292 = arith.select %281, %290, %291 : vector<16x64xi1>, vector<16x64xf32>
    %293 = arith.maximumf %289, %292 : vector<16x64xf32>
    %c0_158 = arith.constant 0 : index
    %c0_159 = arith.constant 0 : index
    %294 = vector.load %arg7[%c0_158, %c0_159] : memref<64x16xf32, #tpu.memory_space<vmem>>, vector<64x16xf32>
    %cst_160 = arith.constant dense<0.000000e+00> : vector<16x16xf32>
    %295 = tpu.matmul %293, %294, %cst_160 {dimension_numbers = #tpu.dot_dimension_numbers<[1], [0], [0], [1], [0, 0, 1, 1], [], []>} : vector<16x64xf32>, vector<64x16xf32>, vector<16x16xf32> -> vector<16x16xf32>
    %c0_161 = arith.constant 0 : index
    %c0_162 = arith.constant 0 : index
    %296 = vector.load %arg8[%c0_161, %c0_162] : memref<16x4xf32, #tpu.memory_space<vmem>>, vector<16x4xf32>
    %cst_163 = arith.constant dense<0.000000e+00> : vector<16x4xf32>
    %297 = tpu.matmul %295, %296, %cst_163 {dimension_numbers = #tpu.dot_dimension_numbers<[1], [0], [0], [1], [0, 0, 1, 1], [], []>} : vector<16x16xf32>, vector<16x4xf32>, vector<16x4xf32> -> vector<16x4xf32>
    %c0_164 = arith.constant 0 : index
    %c0_165 = arith.constant 0 : index
    %c0_166 = arith.constant 0 : index
    %298 = vector.load %arg9[%c0_164, %c0_165, %c0_166] : memref<1x16x4xf32, #tpu.memory_space<vmem>>, vector<1x16x4xf32>
    %299 = vector.shape_cast %298 : vector<1x16x4xf32> to vector<16x4xf32>
    %300 = vector.shape_cast %297 : vector<16x4xf32> to vector<1x16x4xf32>
    tpu.vector_store %arg9[%c0_164, %c0_165, %c0_166], %300 {strides = array<i32>} : memref<1x16x4xf32, #tpu.memory_space<vmem>>, vector<1x16x4xf32>,
    return
  }
  func.func @transform_0(%arg0: i32) -> (i32, i32, i32) {
    %c0_i32 = arith.constant 0 : i32
    %c0_i32_0 = arith.constant 0 : i32
    %c0_i32_1 = arith.constant 0 : i32
    return %arg0, %c0_i32, %c0_i32_0 : i32, i32, i32
  }
  func.func @transform_1(%arg0: i32) -> (i32, i32, i32) {
    %c0_i32 = arith.constant 0 : i32
    %c0_i32_0 = arith.constant 0 : i32
    %c0_i32_1 = arith.constant 0 : i32
    %c0_i32_2 = arith.constant 0 : i32
    return %c0_i32, %c0_i32_0, %c0_i32_1 : i32, i32, i32
  }
  func.func @transform_2(%arg0: i32) -> (i32, i32) {
    %c0_i32 = arith.constant 0 : i32
    %c0_i32_0 = arith.constant 0 : i32
    %c0_i32_1 = arith.constant 0 : i32
    return %c0_i32, %c0_i32_0 : i32, i32
  }
  func.func @transform_3(%arg0: i32) -> (i32, i32, i32) {
    %c0_i32 = arith.constant 0 : i32
    %c0_i32_0 = arith.constant 0 : i32
    %c0_i32_1 = arith.constant 0 : i32
    %c0_i32_2 = arith.constant 0 : i32
    return %c0_i32, %c0_i32_0, %c0_i32_1 : i32, i32, i32
  }
  func.func @transform_4(%arg0: i32) -> (i32, i32) {
    %c0_i32 = arith.constant 0 : i32
    %c0_i32_0 = arith.constant 0 : i32
    %c0_i32_1 = arith.constant 0 : i32
    return %c0_i32, %c0_i32_0 : i32, i32
  }
  func.func @transform_5(%arg0: i32) -> (i32, i32) {
    %c0_i32 = arith.constant 0 : i32
    %c0_i32_0 = arith.constant 0 : i32
    %c0_i32_1 = arith.constant 0 : i32
    return %c0_i32, %c0_i32_0 : i32, i32
  }
  func.func @transform_6(%arg0: i32) -> (i32, i32) {
    %c0_i32 = arith.constant 0 : i32
    %c0_i32_0 = arith.constant 0 : i32
    %c0_i32_1 = arith.constant 0 : i32
    return %c0_i32, %c0_i32_0 : i32, i32
  }
  func.func @transform_7(%arg0: i32) -> (i32, i32) {
    %c0_i32 = arith.constant 0 : i32
    %c0_i32_0 = arith.constant 0 : i32
    %c0_i32_1 = arith.constant 0 : i32
    return %c0_i32, %c0_i32_0 : i32, i32
  }
  func.func @transform_8(%arg0: i32) -> (i32, i32, i32) {
    %c0_i32 = arith.constant 0 : i32
    %c0_i32_0 = arith.constant 0 : i32
    %c0_i32_1 = arith.constant 0 : i32
    return %arg0, %c0_i32, %c0_i32_0 : i32, i32, i32
  }
}

</mosaic_0001>

<bundles_post_ra>
// kernel: feature_extractor_forward.1
= control target key start
LH: loop header
LB: loop body
LE: loop exit
PB: predicated region body
PF: predicated region fallthrough
CT: control target
= control target key end

     0   :  { %s3005_s27 = smov 0   ;;  %s3750_s0 = inlined_call_operand.vmem [shape: f32[2,4,256], index: 0, kind: input, shape index: {}]   ;;  %s3751_s1 = inlined_call_operand.vmem [shape: f32[9,8,4], index: 1, kind: input, shape index: {}]   ;;  %s3752_s2 = inlined_call_operand.vmem [shape: f32[8,1], index: 2, kind: input, shape index: {}]   ;;  %s3753_s3 = inlined_call_operand.vmem [shape: f32[9,16,8], index: 3, kind: input, shape index: {}]   ;;  %s3754_s4 = inlined_call_operand.vmem [shape: f32[16,1], index: 4, kind: input, shape index: {}]   ;;  %s3755_s5 = inlined_call_operand.vmem [shape: f32[256,64], index: 5, kind: input, shape index: {}]   ;;  %s3756_s6 = inlined_call_operand.vmem [shape: f32[64,16], index: 6, kind: input, shape index: {}]   ;;  %s3757_s7 = inlined_call_operand.vmem [shape: f32[16,4], index: 7, kind: input, shape index: {}]   ;;  %s3758_s8 = inlined_call_operand.vmem [shape: f32[2,16,4], index: 8, kind: output, shape index: {}]  }
   0x1 LB: > { %s2544_s28 = sadd.s32 4294967295, %s2938_s27   ;;  %p2548_p0 = scmp.ge.s32.totalorder %s2938_s27, 1  ;;  %s2938_s27 = sphi %s3005_s27, %s18_s27  }
   0x2   : > { %p262_p1 = scmp.lt.s32.totalorder %s2938_s27, 3 }
   0x4   : > { %p263_p2 = pnand %p2548_p0, %p262_p1 }
   0x5   : > { %v307_v0 = vlaneseq (!%p263_p2)  ;;  %p296_p3 = scmp.lt.s32.totalorder (!%p263_p2), %s2544_s28, 1  ;;  %s2940_s11 = smov (!%p263_p2), 1   ;;  %v2942_v7 = vmov (!%p263_p2), 0.0   ;;  %v1188_v8 = vld [vmem:[%s3752_s2] sm:$0xff] (!%p263_p2)  ;;  %v2949_v9 = vmov (!%p263_p2), 0   ;;  %vm383_vm5 = vcmask (!%p263_p2), 1043456  }
   0x6   : > { %266 = sbr.rel (%p263_p2) target bundleno = 2417 (0x971), region = 52  ;;  %s2941_s12 = smov (!%p263_p2), 16   ;;  %454 = vmatprep.mubr.f32.mxu0 (!%p263_p2), %v2942_v7  ;;  %2899 = vset.pattern.permute.xlu0 (!%p263_p2), %v2949_v9  ;;  %v2555_v38 = vld [vmem:[%s3751_s1 + $0x8] sm:$0xff] (!%p263_p2)  ;;  %vm379_vm9 = vcmask (!%p263_p2), 31744   ;;  %v358_v53 = vld [vmem:[%s3751_s1] sm:$0xff] (!%p263_p2)  ;;  %v1249_v55 = vld [vmem:[%s3755_s5 + $0x18] sm:$0xff] (!%p263_p2) }
   0x7   : > { %v3013_v1 = vand.u32 (!%p263_p2), 127, %v307_v0  ;;  %s2943_s13 = smov (!%p263_p2), 112   ;;  %s2944_s14 = smov (!%p263_p2), 17   ;;  %2930 = vset.pattern.permute.xlu1 (!%p263_p2), %v2949_v9  ;;  %v1267_v57 = vld [vmem:[%s3755_s5 + $0xa8] sm:$0xff] (!%p263_p2) }
   0x8   : > { %s2945_s15 = smov (!%p263_p2), 111   ;;  %s2946_s16 = smov (!%p263_p2), 15  }
   0x9   : > { %v3018_v2 = vcvt.s32.f32 (!%p263_p2), %v3013_v1  ;;  %v3022_v3 = vadd.s32 (!%p263_p2), 128, %v3013_v1  ;;  %s2947_s17 = smov (!%p263_p2), 113   ;;  %s2948_s18 = smov (!%p263_p2), 127   ;;  %vm316_vm0 = vcmp.lt.s32.totalorder (!%p263_p2), %v3013_v1, 1  ;;  %vm3759_vm1 = vcmp.eq.s32.totalorder (!%p263_p2), %v3013_v1, 0 }
   0xa   : > { %v327_v14 = vshra.s32 (!%p263_p2), %v3013_v1, 4  ;;  %vm3762_vm2 = vcmp.lt.s32.totalorder (!%p263_p2), %v3013_v1, 16  ;;  %vm370_vm3 = vcmp.lt.s32.totalorder (!%p263_p2), %v3013_v1, 112  ;;  %v329_v27 = vand.u32 (!%p263_p2), 15, %v3013_v1  ;;  %s2956_s19 = smov (!%p263_p2), 8   ;;  %s2957_s20 = smov (!%p263_p2), 55  }
   0xb   : > { %312 = vrot.lane.b32.xlu0 (!%p263_p2), %v3018_v2, %s2940_s11  ;;  %v311_v5 = vcvt.s32.f32 (!%p263_p2), %v3022_v3  ;;  %v3070_v12 = vadd.f32 (!%p263_p2), -1.0, %v3018_v2  ;;  %v328_v15 = vshra.s32 (!%p263_p2), %v3022_v3, 4  ;;  %v330_v28 = vand.u32 (!%p263_p2), 15, %v3022_v3  ;;  %s2958_s21 = smov (!%p263_p2), 54   ;;  %s2959_s26 = smov (!%p263_p2), 65  }
   0xc   : > { %vm3093_vm6 = vcmp.ge.s32.totalorder (!%p263_p2), %v327_v14, 1  ;;  %vm3139_vm10 = vcmp.ge.s32.totalorder (!%p263_p2), %v329_v27, 1  ;;  %vm3760_vm12 = vcmp.lt.s32.totalorder (!%p263_p2), %v3013_v1, 17  ;;  %vm3761_vm13 = vcmp.lt.s32.totalorder (!%p263_p2), %v3013_v1, 111 }
   0xd   : > { %s3801_s28 = smov (!%p296_p3, %s2544_s28), 1  ;;  %v2554_v16 = vadd.f32 -1.0, %v311_v5  ;;  %v323_v18 = vsel %vm3759_vm1, 255.0, %v3070_v12  ;;  %vm3087_vm4 = vcmp.ge.s32.totalorder %v328_v15, 1  ;;  %vm3144_vm11 = vcmp.ge.s32.totalorder %v330_v28, 1  ;;  %vm354_vm14 = vmand %vm3093_vm6, %vm3139_vm10 }
   0xe   : > { %s2638_s29 = sshll.u32 %s3801_s28, 3  ;;  %vm355_vm15 = vmand %vm3087_vm4, %vm3144_vm11  ;;  %vm3189_vm1 = vcmp.le.s32.totalorder %v329_v27, 14  ;;  %v2566_v27 = vld [vmem:[%s3751_s1 + $0x18] sm:$0xff] }
   0xf   : > { %s300_s10 = scalar_lea.vmem %s3750_s0, %s2638_s29  ;;  %314 = vrot.lane.b32.xlu0 %v311_v5, %s2940_s11 }
  0x10   : > { %v3029_v4 = vld [vmem:[%s300_s10] sm:$0xff] }
  0x11   : > { %359 = vrot.lane.b32.xlu1 %v3029_v4, %s2941_s12  ;;  %v3036_v6 = vcombine.high %v3029_v4, %v3029_v4 }
  0x13   : > { %366 = vrot.lane.b32.xlu0 %v3029_v4, %s2943_s13 }
  0x15   : > { %361 = vrot.lane.b32.xlu1 %v3036_v6, %s2941_s12 }
  0x17   : > { %334 = vrot.lane.b32.xlu0 %v3029_v4, %s2944_s14 }
  0x19   : > { %368 = vrot.lane.b32.xlu1 %v3036_v6, %s2943_s13 }
  0x1b   : > { %341 = vrot.lane.b32.xlu0 %v3029_v4, %s2945_s15 }
  0x1d   : > { %336 = vrot.lane.b32.xlu1 %v3036_v6, %s2944_s14 }
  0x1f   : > { %541 = vrot.lane.b32.xlu0 %v3029_v4, %s2946_s16 }
  0x21   : > { %343 = vrot.lane.b32.xlu1 %v3036_v6, %s2945_s15 }
  0x23   : > { %548 = vrot.lane.b32.xlu0 %v3029_v4, %s2947_s17 }
  0x25   : > { %543 = vrot.lane.b32.xlu1 %v3036_v6, %s2946_s16 }
  0x27   : > { %647 = vrot.lane.b32.xlu0 %v3029_v4, %s2940_s11 }
  0x29   : > { %550 = vrot.lane.b32.xlu1 %v3036_v6, %s2947_s17 }
  0x2b   : > { %653 = vrot.lane.b32.xlu0 %v3029_v4, %s2948_s18 }
  0x2d   : > { %649 = vrot.lane.b32.xlu1 %v3036_v6, %s2940_s11 }
  0x2f   : > { %1191 = vperm.xlu0 %2899, %v1188_v8  }
  0x31   : > { %655 = vrot.lane.b32.xlu1 %v3036_v6, %s2948_s18 }
  0x7d   : > { %v313_v10 = vpop.permute.xlu0 %312 }
  0x81   : > { %v315_v13 = vpop.permute.xlu0 %314 }
  0x82   : > { %v317_v19 = vsel %vm316_vm0, %v313_v10, %v315_v13  ;;  %v318_v20 = vsel %vm316_vm0, %v315_v13, %v313_v10  ;;  %v2562_v10 = vld [vmem:[%s3751_s1 + $0x10] sm:$0xff] }
  0x83   : > { %v360_v11 = vpop.permute.xlu1 %359  ;;  %vm3097_vm7 = vcmp.eq.f32.partialorder %v318_v20, %v323_v18  ;;  %vm3101_vm8 = vcmp.eq.f32.partialorder %v317_v19, %v2554_v16 }
  0x85   : > { %v367_v21 = vpop.permute.xlu0 %366 }
  0x87   : > { %v362_v17 = vpop.permute.xlu1 %361 }
  0x88   : > { %v3109_v29 = vsel %vm3762_vm2, %v360_v11, %v362_v17  ;;  %v3113_v30 = vsel %vm3762_vm2, %v362_v17, %v360_v11 }
  0x89   : > { %v335_v35 = vpop.permute.xlu0 %334 }
  0x8b   : > { %v369_v26 = vpop.permute.xlu1 %368 }
  0x8c   : > { %v3117_v31 = vsel %vm370_vm3, %v367_v21, %v369_v26  ;;  %v3121_v32 = vsel %vm370_vm3, %v369_v26, %v367_v21 }
  0x8d   : > { %v374_v33 = vsel %vm3101_vm8, %v3109_v29, %v3121_v32  ;;  %v373_v34 = vsel %vm3097_vm7, %v3113_v30, %v3117_v31  ;;  %v342_v42 = vpop.permute.xlu0 %341  ;;  %v1010_v41 = vsel %vm3097_vm7, %v3117_v31, %v3113_v30 }
  0x8e   : > { %v376_v36 = vsel %vm3087_vm4, %v374_v33, 0.0  ;;  %v375_v37 = vsel %vm3093_vm6, %v373_v34, 0.0 }
  0x8f   : > { %2556 = vmatprep.subr.msk.mxu0 %vm383_vm5, %v376_v36  ;;  %v337_v39 = vpop.permute.xlu1 %336 }
  0x90   : > { %2557 = vmatpush1.msk.msra.mxu0 %vm383_vm5, %v375_v37  ;;  %v3162_v44 = vsel %vm3760_vm12, %v335_v35, %v337_v39  ;;  %v3166_v45 = vsel %vm3760_vm12, %v337_v39, %v335_v35  ;;  %vm545_vm12 = vcmp.lt.s32.totalorder %v3013_v1, 15  ;;  %v2570_v35 = vld [vmem:[%s3751_s1 + $0x20] sm:$0xff] }
  0x91   : > { %2558 = vmatmul.mubr.msk.f32.vlgmr.msra.gmra.mrb[0].mxu0 %vm379_vm9, %v2555_v38  ;;  %v542_v51 = vpop.permute.xlu0 %541  ;;  %v2574_v38 = vld [vmem:[%s3751_s1 + $0x28] sm:$0xff] }
  0x92   : > { %534 = vmatprep.mubr.f32.mxu0 %v2942_v7 }
  0x93   : > { %v344_v43 = vpop.permute.xlu1 %343 }
  0x94   : > { %v3170_v46 = vsel %vm3761_vm13, %v342_v42, %v344_v43  ;;  %v3174_v47 = vsel %vm3761_vm13, %v344_v43, %v342_v42  ;;  %vm3200_vm13 = vcmp.le.s32.totalorder %v330_v28, 14  ;;  %v2582_v43 = vld [vmem:[%s3751_s1 + $0x38] sm:$0xff] }
  0x95   : > { %v348_v48 = vsel %vm3097_vm7, %v3166_v45, %v3170_v46  ;;  %v349_v49 = vsel %vm3101_vm8, %v3162_v44, %v3174_v47  ;;  %v549_v56 = vpop.permute.xlu0 %548  ;;  %vm560_vm2 = vmand %vm3087_vm4, %vm3200_vm13  ;;  %vm657_vm4 = vcmp.lt.s32.totalorder %v3013_v1, 127  ;;  %v1098_v31 = vsel %vm3097_vm7, %v3170_v46, %v3166_v45  ;;  %v1262_v45 = vld [vmem:[%s3755_s5 + $0x80] sm:$0xff]  ;;  %v1263_v46 = vld [vmem:[%s3755_s5 + $0x88] sm:$0xff] }
  0x96   : > { %v356_v50 = vsel %vm354_vm14, %v348_v48, 0.0  ;;  %v357_v52 = vsel %vm355_vm15, %v349_v49, 0.0  ;;  %vm552_vm14 = vcmp.lt.s32.totalorder %v3013_v1, 113  ;;  %vm559_vm15 = vmand %vm3093_vm6, %vm3189_vm1  ;;  %v1246_v48 = vld [vmem:[%s3755_s5] sm:$0xff]  ;;  %v2787_v49 = vpack.c.bf16 %v1263_v46, %v1262_v45 }
  0x97   : > { %2559 = vmatprep.subr.msk.mxu0 %vm383_vm5, %v357_v52  ;;  %v544_v54 = vpop.permute.xlu1 %543 }
  0x98   : > { %2560 = vmatpush1.msk.msra.mxu0 %vm383_vm5, %v356_v50  ;;  %v546_v59 = vsel %vm545_vm12, %v542_v51, %v544_v54  ;;  %v547_v60 = vsel %vm545_vm12, %v544_v54, %v542_v51  ;;  %vm3278_vm12 = vcmp.le.s32.totalorder %v327_v14, 14  ;;  %v1011_v14 = vsel %vm3101_vm8, %v3121_v32, %v3109_v29  ;;  %v2578_v29 = vld [vmem:[%s3751_s1 + $0x30] sm:$0xff]  ;;  %v1265_v51 = vld [vmem:[%s3755_s5 + $0x98] sm:$0xff]  ;;  %2788 = vmatprep.subr.bf16.mxu1 %v2787_v49 }
  0x99   : > { %2561 = vmatmul.mubr.msk.f32.vlgmr.msra.gmra.mrb[0].mxu0 %vm379_vm9, %v358_v53  ;;  %v648_v8 = vpop.permute.xlu0 %647  ;;  %v1099_v32 = vsel %vm3101_vm8, %v3174_v47, %v3162_v44  ;;  %v1012_v42 = vsel %vm3278_vm12, %v1010_v41, 0.0  ;;  %v2586_v47 = vld [vmem:[%s3751_s1 + $0x40] sm:$0xff]  ;;  %v1264_v50 = vld [vmem:[%s3755_s5 + $0x90] sm:$0xff] }
  0x9a   : > { %638 = vmatprep.mubr.f32.mxu0 %v2942_v7  ;;  %v2791_v53 = vpack.c.bf16 %v1265_v51, %v1264_v50  ;;  %v1248_v54 = vld [vmem:[%s3755_s5 + $0x10] sm:$0xff] }
  0x9b   : > { %v551_v58 = vpop.permute.xlu1 %550  ;;  %v1276_v41 = vld [vmem:[%s3755_s5 + $0xf0] sm:$0xff] }
  0x9c   : > { %v553_v61 = vsel %vm552_vm14, %v549_v56, %v551_v58  ;;  %v554_v62 = vsel %vm552_vm14, %v551_v58, %v549_v56  ;;  %vm1100_vm14 = vmand %vm3278_vm12, %vm3189_vm1  ;;  %v1266_v56 = vld [vmem:[%s3755_s5 + $0xa0] sm:$0xff]  ;;  %v2793_v58 = vpack.c.bf16 %v1249_v55, %v1248_v54 }
  0x9d   : > { %v555_v63 = vsel %vm3097_vm7, %v547_v60, %v553_v61  ;;  %v556_v0 = vsel %vm3101_vm8, %v546_v59, %v554_v62  ;;  %v654_v13 = vpop.permute.xlu0 %653  ;;  %v918_v37 = vsel %vm3097_vm7, %v553_v61, %v547_v60  ;;  %v1102_v44 = vsel %vm1100_vm14, %v1098_v31, 0.0  ;;  %v1250_v60 = vld [vmem:[%s3755_s5 + $0x20] sm:$0xff]  ;;  %v1251_v61 = vld [vmem:[%s3755_s5 + $0x28] sm:$0xff] }
  0x9e   : > { %v561_v5 = vsel %vm559_vm15, %v555_v63, 0.0  ;;  %v562_v9 = vsel %vm560_vm2, %v556_v0, 0.0  ;;  %vm3260_vm2 = vcmp.le.s32.totalorder %v328_v15, 14  ;;  %v1269_v63 = vld [vmem:[%s3755_s5 + $0xb8] sm:$0xff]  ;;  %v2797_v0 = vpack.c.bf16 %v1251_v61, %v1250_v60  ;;  %v1275_v15 = vld [vmem:[%s3755_s5 + $0xe8] sm:$0xff] }
  0x9f   : > { %2563 = vmatprep.subr.msk.mxu0 %vm383_vm5, %v562_v9  ;;  %v650_v11 = vpop.permute.xlu1 %649  ;;  %vm923_vm6 = vmand %vm3260_vm2, %vm3144_vm11  ;;  %v1013_v40 = vsel %vm3260_vm2, %v1011_v14, 0.0  ;;  %v1253_v9 = vld [vmem:[%s3755_s5 + $0x38] sm:$0xff]  ;;  %v1259_v14 = vld [vmem:[%s3755_s5 + $0x68] sm:$0xff] }
  0xa0   : > { %2564 = vmatpush1.msk.msra.mxu0 %vm383_vm5, %v561_v5  ;;  %v651_v17 = vsel %vm316_vm0, %v648_v8, %v650_v11  ;;  %v652_v18 = vsel %vm316_vm0, %v650_v11, %v648_v8  ;;  %v1252_v8 = vld [vmem:[%s3755_s5 + $0x30] sm:$0xff]  ;;  %v1270_v11 = vld [vmem:[%s3755_s5 + $0xc0] sm:$0xff] }
  0xa1   : > { %2565 = vmatmul.mubr.msk.f32.vlgmr.msra.gmra.mrb[0].mxu0 %vm379_vm9, %v2562_v10  ;;  %v2801_v10 = vpack.c.bf16 %v1253_v9, %v1252_v8 }
  0xa2   : > { %739 = vmatprep.mubr.f32.mxu0 %v2942_v7 }
  0xa3   : > { %v656_v16 = vpop.permute.xlu1 %655 }
  0xa4   : > { %v658_v19 = vsel %vm657_vm4, %v654_v13, %v656_v16  ;;  %v659_v20 = vsel %vm657_vm4, %v656_v16, %v654_v13  ;;  %v1271_v13 = vld [vmem:[%s3755_s5 + $0xc8] sm:$0xff] }
  0xa5   : > { %v660_v21 = vsel %vm3097_vm7, %v652_v18, %v658_v19  ;;  %v661_v22 = vsel %vm3101_vm8, %v651_v17, %v659_v20  ;;  %v831_v28 = vsel %vm3101_vm8, %v659_v20, %v651_v17  ;;  %v830_v34 = vsel %vm3097_vm7, %v658_v19, %v652_v18  ;;  %v1254_v17 = vld [vmem:[%s3755_s5 + $0x40] sm:$0xff]  ;;  %v1255_v18 = vld [vmem:[%s3755_s5 + $0x48] sm:$0xff] }
  0xa6   : > { %v662_v23 = vsel %vm3139_vm10, %v660_v21, 0.0  ;;  %v663_v26 = vsel %vm3144_vm11, %v661_v22, 0.0  ;;  %v833_v33 = vsel %vm3200_vm13, %v831_v28, 0.0  ;;  %v832_v36 = vsel %vm3189_vm1, %v830_v34, 0.0  ;;  %vm922_vm11 = vmand %vm3278_vm12, %vm3139_vm10  ;;  %v1272_v22 = vld [vmem:[%s3755_s5 + $0xd0] sm:$0xff]  ;;  %v1257_v34 = vld [vmem:[%s3755_s5 + $0x58] sm:$0xff] }
  0xa7   : > { %2567 = vmatprep.subr.msk.mxu0 %vm383_vm5, %v663_v26  ;;  %v924_v39 = vsel %vm922_vm11, %v918_v37, 0.0  ;;  %vm1101_vm10 = vmand %vm3260_vm2, %vm3200_vm13  ;;  %v2803_v16 = vpack.c.bf16 %v1271_v13, %v1270_v11  ;;  %v2805_v20 = vpack.c.bf16 %v1255_v18, %v1254_v17 }
  0xa8   : > { %2568 = vmatpush1.msk.msra.mxu0 %vm383_vm5, %v662_v23  ;;  %v1103_v30 = vsel %vm1101_vm10, %v1099_v32, 0.0  ;;  %v1273_v23 = vld [vmem:[%s3755_s5 + $0xd8] sm:$0xff] }
  0xa9   : > { %2569 = vmatmul.mubr.msk.f32.vlgmr.msra.gmra.mrb[0].mxu0 %vm379_vm9, %v2566_v27  ;;  %2571 = vmatprep.subr.msk.mxu0 %vm383_vm5, %v3036_v6  ;;  %v2807_v28 = vpack.c.bf16 %v1273_v23, %v1272_v22 }
  0xaa   : > { %2572 = vmatpush1.msk.msra.mxu0 %vm383_vm5, %v3029_v4  ;;  %821 = vmatprep.mubr.f32.mxu0 %v2942_v7  ;;  %v919_v4 = vsel %vm3101_vm8, %v554_v62, %v546_v59  ;;  %v2795_v59 = vpack.c.bf16 %v1267_v57, %v1266_v56  ;;  %v1268_v62 = vld [vmem:[%s3755_s5 + $0xb0] sm:$0xff] }
  0xab   : > { %2575 = vmatprep.subr.msk.mxu0 %vm383_vm5, %v833_v33  ;;  %v925_v3 = vsel %vm923_vm6, %v919_v4, 0.0  ;;  %v2799_v5 = vpack.c.bf16 %v1269_v63, %v1268_v62  ;;  %v1256_v33 = vld [vmem:[%s3755_s5 + $0x50] sm:$0xff] }
  0xac   : > { %v2809_v6 = vpack.c.bf16 %v1257_v34, %v1256_v33 }
  0xae   : > { %v1192_v19 = vpop.permute.xlu0 %1191 }
  0xb1   : > { %2573 = vmatmul.mubr.msk.f32.vlgmr.msra.gmra.mrb[0].mxu0 %vm379_vm9, %v2570_v35 }
  0xb2   : > { %2576 = vmatpush1.msk.msra.mxu0 %vm383_vm5, %v832_v36  ;;  %909 = vmatprep.mubr.f32.mxu0 %v2942_v7 }
  0xb3   : > { %2579 = vmatprep.subr.msk.mxu0 %vm383_vm5, %v925_v3  ;;  %v1274_v3 = vld [vmem:[%s3755_s5 + $0xe0] sm:$0xff] }
  0xb4   : > { %v2811_v37 = vpack.c.bf16 %v1275_v15, %v1274_v3 }
  0xb9   : > { %2577 = vmatmul.mubr.msk.f32.vlgmr.msra.gmra.mrb[0].mxu0 %vm379_vm9, %v2574_v38  ;;  %v1258_v38 = vld [vmem:[%s3755_s5 + $0x60] sm:$0xff] }
  0xba   : > { %2580 = vmatpush1.msk.msra.mxu0 %vm383_vm5, %v924_v39  ;;  %1001 = vmatprep.mubr.f32.mxu0 %v2942_v7 }
  0xbb   : > { %2583 = vmatprep.subr.msk.mxu0 %vm383_vm5, %v1013_v40  ;;  %v2813_v40 = vpack.c.bf16 %v1259_v14, %v1258_v38 }
  0xc1   : > { %2581 = vmatmul.mubr.msk.f32.vlgmr.msra.gmra.mrb[0].mxu0 %vm379_vm9, %v2578_v29  ;;  %v1277_v29 = vld [vmem:[%s3755_s5 + $0xf8] sm:$0xff] }
  0xc2   : > { %2584 = vmatpush1.msk.msra.mxu0 %vm383_vm5, %v1012_v42  ;;  %1089 = vmatprep.mubr.f32.mxu0 %v2942_v7  ;;  %v2815_v32 = vpack.c.bf16 %v1277_v29, %v1276_v41  ;;  %v1260_v42 = vld [vmem:[%s3755_s5 + $0x70] sm:$0xff] }
  0xc3   : > { %2587 = vmatprep.subr.msk.mxu0 %vm383_vm5, %v1103_v30  ;;  %v1261_v30 = vld [vmem:[%s3755_s5 + $0x78] sm:$0xff] }
  0xc4   : > { %v2817_v31 = vpack.c.bf16 %v1261_v30, %v1260_v42  ;;  %v2590_v30 = vld [vmem:[%s3753_s3 + $0x10] sm:$0xff] }
  0xc9   : > { %2585 = vmatmul.mubr.msk.f32.vlgmr.msra.gmra.mrb[0].mxu0 %vm379_vm9, %v2582_v43 }
  0xca   : > { %2588 = vmatpush1.msk.msra.mxu0 %vm383_vm5, %v1102_v44  ;;  %1179 = vmatprep.mubr.f32.mxu0 %v2942_v7  ;;  %v1247_v7 = vld [vmem:[%s3755_s5 + $0x8] sm:$0xff]  ;;  %vm3785_vm5 = vcmp.lt.s32.totalorder %v3013_v1, 111 }
  0xcb   : > { %v2789_v52 = vpack.c.bf16 %v1247_v7, %v1246_v48  ;;  %vm3786_vm13 = vmmov %vm3785_vm5 }
  0xcd   : > { %2790 = vmatpush3.bf16.msra.mxu1 %v2789_v52 }
  0xce   : > { %2792 = vmatprep.subr.bf16.mxu1 %v2791_v53 }
  0xd1   : > { %2589 = vmatmul.mubr.msk.f32.vlgmr.msra.gmra.mrb[0].mxu0 %vm379_vm9, %v2586_v47  ;;  %2794 = vmatpush3.bf16.msra.mxu1 %v2793_v58 }
  0xd2   : > { %2796 = vmatprep.subr.bf16.mxu1 %v2795_v59 }
  0xd5   : > { %2798 = vmatpush3.bf16.msra.mxu1 %v2797_v0 }
  0xd6   : > { %2800 = vmatprep.subr.bf16.mxu1 %v2799_v5 }
  0xd9   : > { %2802 = vmatpush3.bf16.msra.mxu1 %v2801_v10 }
  0xda   : > { %2804 = vmatprep.subr.bf16.mxu1 %v2803_v16 }
  0xdd   : > { %2806 = vmatpush3.bf16.msra.mxu1 %v2805_v20 }
  0xde   : > { %2808 = vmatprep.subr.bf16.mxu1 %v2807_v28 }
  0xe1   : > { %2810 = vmatpush3.bf16.msra.mxu1 %v2809_v6 }
  0xe2   : > { %2812 = vmatprep.subr.bf16.mxu1 %v2811_v37 }
  0xe5   : > { %2814 = vmatpush3.bf16.msra.mxu1 %v2813_v40 }
  0xe6   : > { %2816 = vmatprep.subr.bf16.mxu1 %v2815_v32 }
  0xe9   : > { %2818 = vmatpush3.bf16.msra.mxu1 %v2817_v31 }
 0x1a4   : > { %v1181_v21 = vpop.f32.mrb[0].mxu0 }
 0x1a5   : > { %v3406_v26 = vadd.f32 %v1192_v19, %v1181_v21  ;;  %v1183_v27 = vpop.f32.mrb[1].mxu0 }
 0x1a6   : > { %v1195_v35 = vadd.f32 %v1192_v19, %v1183_v27 }
 0x1a7   : > { %v1196_v4 = vmax.f32 %v3406_v26, 0.0 }
 0x1a8   : > { %v1197_v36 = vmax.f32 %v1195_v35, 0.0 }
 0x1aa   : > { %v2910_v39 = vpack.i.bf16 %v1197_v36, %v1196_v4 }
 0x1ac   : > { %2911 = vrot.lane.b32.xlu0 %v2910_v39, %s2943_s13  ;;  %2901 = vrot.lane.b32.xlu1 %v2910_v39, %s2948_s18  ;;  %s2952_s13 = smov 56   ;;  %s2955_s18 = smov 62  }
 0x1b0   : > { %2921 = vrot.lane.b32.xlu0 %v2910_v39, %s2945_s15  ;;  %2906 = vrot.lane.b32.xlu1 %v2910_v39, %s2940_s11  ;;  %s2950_s11 = smov 64   ;;  %s2954_s15 = smov 7  }
 0x1b4   : > { %2916 = vrot.lane.b32.xlu1 %v2910_v39, %s2941_s12  ;;  %s2951_s12 = smov 63  }
 0x1b8   : > { %2926 = vrot.lane.b32.xlu1 %v2910_v39, %s2944_s14  ;;  %s2953_s14 = smov 6  }
 0x1bc   : > { %1349 = vrot.lane.b32.xlu1 %v3018_v2, %s2950_s11 }
 0x21e   : > { %v2902_v43 = vpop.permute.xlu1 %2901  ;;  %v2912_v44 = vpop.permute.xlu0 %2911 }
 0x21f   : > { %v2904_v45 = vunpack.i.h.bf16 %v2902_v43  ;;  %v2903_v46 = vunpack.i.l.bf16 %v2902_v43  ;;  %v2914_v7 = vunpack.i.h.bf16 %v2912_v44  ;;  %v2913_v50 = vunpack.i.l.bf16 %v2912_v44 }
 0x221   : > { %v1202_v55 = vsel %vm657_vm4, %v2903_v46, %v2904_v45  ;;  %v1203_v56 = vsel %vm657_vm4, %v2904_v45, %v2903_v46  ;;  %v1218_v63 = vsel %vm370_vm3, %v2913_v50, %v2914_v7  ;;  %v1219_v5 = vsel %vm370_vm3, %v2914_v7, %v2913_v50 }
 0x222   : > { %v2907_v47 = vpop.permute.xlu1 %2906  ;;  %v2922_v51 = vpop.permute.xlu0 %2921  ;;  %vm3787_vm3 = vcmp.lt.s32.totalorder %v3013_v1, 17  ;;  %vm1348_vm4 = vcmask 1048064  }
 0x223   : > { %v2909_v48 = vunpack.i.h.bf16 %v2907_v47  ;;  %v2908_v49 = vunpack.i.l.bf16 %v2907_v47  ;;  %v2924_v59 = vunpack.i.h.bf16 %v2922_v51  ;;  %v2923_v60 = vunpack.i.l.bf16 %v2922_v51  ;;  %vm3788_vm15 = vmmov %vm3787_vm3  ;;  %v2217_v51 = vld [vmem:[%s3754_s4] sm:$0xff] }
 0x225   : > { %v1208_v52 = vsel %vm316_vm0, %v2908_v49, %v2909_v48  ;;  %v1209_v53 = vsel %vm316_vm0, %v2909_v48, %v2908_v49  ;;  %vm3783_vm0 = vcmp.lt.s32.totalorder %v3013_v1, 16  ;;  %v1234_v19 = vsel %vm3785_vm5, %v2923_v60, %v2924_v59 }
 0x226   : > { %v2917_v54 = vpop.permute.xlu1 %2916  ;;  %v1210_v61 = vsel %vm3097_vm7, %v1202_v55, %v1209_v53  ;;  %v1211_v62 = vsel %vm3101_vm8, %v1203_v56, %v1208_v52  ;;  %vm3784_vm1 = vmmov %vm3783_vm0  ;;  %v1235_v20 = vsel %vm3786_vm13, %v2924_v59, %v2923_v60  ;;  %v2218_v53 = vld [vmem:[%s3754_s4 + $0x8] sm:$0xff]  ;;  %v1362_v55 = vand.u32 7, %v3013_v1 }
 0x227   : > { %v2919_v57 = vunpack.i.h.bf16 %v2917_v54  ;;  %v2918_v58 = vunpack.i.l.bf16 %v2917_v54  ;;  %v1213_v17 = vmax.f32 %v1197_v36, %v1211_v62  ;;  %v1212_v18 = vmax.f32 %v1196_v4, %v1210_v61  ;;  %v2599_v59 = vld [vmem:[%s3753_s3 + $0x28] sm:$0xff] }
 0x228   : > { %v1361_v54 = vshra.s32 %v3013_v1, 3  ;;  %vm3553_vm12 = vcmp.le.s32.totalorder %v1362_v55, 6  ;;  %vm3567_vm10 = vcmp.ge.s32.totalorder %v1362_v55, 1  ;;  %v2404_v60 = vld [vmem:[%s3757_s7 + $0x8] sm:$0xff]  ;;  %vm2321_vm13 = vcmask 523264  }
 0x229   : > { %v1225_v0 = vsel %vm3783_vm0, %v2919_v57, %v2918_v58  ;;  %v1224_v8 = vsel %vm3784_vm1, %v2918_v58, %v2919_v57 }
 0x22a   : > { %v2927_v9 = vpop.permute.xlu1 %2926  ;;  %v1227_v10 = vsel %vm3101_vm8, %v1219_v5, %v1224_v8  ;;  %v1226_v11 = vsel %vm3097_vm7, %v1218_v63, %v1225_v0  ;;  %vm3549_vm6 = vcmp.ge.s32.totalorder %v1361_v54, 1  ;;  %v2604_v0 = vld [vmem:[%s3753_s3 + $0x38] sm:$0xff]  ;;  %v2608_v8 = vld [vmem:[%s3753_s3 + $0x40] sm:$0xff]  ;;  %vm3605_vm0 = vcmp.le.s32.totalorder %v1361_v54, 6 }
 0x22b   : > { %v2929_v13 = vunpack.i.h.bf16 %v2927_v9  ;;  %v2928_v16 = vunpack.i.l.bf16 %v2927_v9  ;;  %v1229_v22 = vmax.f32 %v1213_v17, %v1227_v10  ;;  %v1228_v26 = vmax.f32 %v1212_v18, %v1226_v11  ;;  %vm1573_vm11 = vmand %vm3549_vm6, %vm3553_vm12  ;;  %v2591_v5 = vld [vmem:[%s3753_s3 + $0x18] sm:$0xff]  ;;  %v1385_v9 = vld [vmem:[%s3753_s3] sm:$0xff] }
 0x22c   : > { %vm1379_vm14 = vmand %vm3549_vm6, %vm3567_vm10  ;;  %v2612_v17 = vld [vmem:[%s3753_s3 + $0x50] sm:$0xff]  ;;  %v2320_v54 = vld [vmem:[%s3756_s6 + $0x38] sm:$0xff] }
 0x22d   : > { %v1241_v21 = vsel %vm3787_vm3, %v2929_v13, %v2928_v16  ;;  %v1240_v23 = vsel %vm3788_vm15, %v2928_v16, %v2929_v13  ;;  %v2609_v13 = vld [vmem:[%s3753_s3 + $0x48] sm:$0xff]  ;;  %vm1940_vm1 = vmand %vm3605_vm0, %vm3567_vm10  ;;  %vm2405_vm3 = vcmask 130048  }
 0x22e   : > { %v1243_v27 = vsel %vm3101_vm8, %v1235_v20, %v1240_v23  ;;  %v1242_v28 = vsel %vm3097_vm7, %v1234_v19, %v1241_v21  ;;  %v1350_v35 = vpop.permute.xlu1 %1349  ;;  %vm3789_vm7 = vcmp.eq.s32.totalorder %v3013_v1, 0  ;;  %vm1402_vm8 = vcmask 64512   ;;  %v2603_v1 = vld [vmem:[%s3753_s3 + $0x30] sm:$0xff]  ;;  %v1386_v16 = vld [vmem:[%s3753_s3 + $0x8] sm:$0xff]  ;;  %v2613_v19 = vld [vmem:[%s3753_s3 + $0x58] sm:$0xff] }
 0x22f   : > { %v1245_v33 = vmax.f32 %v1229_v22, %v1243_v27  ;;  %v1244_v34 = vmax.f32 %v1228_v26, %v1242_v28  ;;  %v1351_v6 = vsel %vm1348_vm4, %v1350_v35, %v3018_v2  ;;  %v1355_v15 = vsel %vm3789_vm7, 63.0, %v3070_v12  ;;  %v2598_v12 = vld [vmem:[%s3753_s3 + $0x20] sm:$0xff]  ;;  %2718 = vmatprep.mubr.msk.f32.mxu0 %vm1402_vm8, %v2590_v30  ;;  %v2618_v22 = vld [vmem:[%s3753_s3 + $0x68] sm:$0xff]  ;;  %v2622_v23 = vld [vmem:[%s3753_s3 + $0x70] sm:$0xff] }
 0x230   : > { %1352 = vrot.lane.b32.xlu1 %v1351_v6, %s2950_s11  ;;  %v2617_v20 = vld [vmem:[%s3753_s3 + $0x60] sm:$0xff]  ;;  %vm2125_vm5 = vmand %vm3605_vm0, %vm3553_vm12  ;;  %v2623_v27 = vld [vmem:[%s3753_s3 + $0x78] sm:$0xff] }
 0x231   : > { %1342 = vmatprep.mubr.f32.mxu1 %v1245_v33  ;;  %v2627_v28 = vld [vmem:[%s3753_s3 + $0x80] sm:$0xff]  ;;  %v2628_v33 = vld [vmem:[%s3753_s3 + $0x88] sm:$0xff] }
 0x232   : > { %1343 = vmatmul.mubr.f32.vlgmr.msra.gmra.mrb[0].mxu1 %v1244_v34 }
 0x233   : > { %2728 = vmatprep.mubr.msk.f32.mxu1 %vm1402_vm8, %v2598_v12 }
 0x2a2   : > { %v1353_v14 = vpop.permute.xlu1 %1352 }
 0x2a3   : > { %v1354_v40 = vsel %vm1348_vm4, %v1353_v14, %v3018_v2 }
 0x305   : > { %v2672_v25 = vpop.f32.mrb[0].mxu1 }
 0x306   : > { %v2673_v4 = vpop.f32.mrb[1].mxu1 }
 0x307   : > { %v3486_v36 = vadd.f32 %v2673_v4, %v2672_v25 }
 0x309   : > { %1363 = vrot.lane.b32.xlu0 %v3486_v36, %s2950_s11 }
 0x37b   : > { %v1364_v24 = vpop.permute.xlu0 %1363 }
 0x37c   : > { %v1365_v3 = vsel %vm1348_vm4, %v1364_v24, %v3486_v36 }
 0x37d   : > { %1366 = vrot.lane.b32.xlu0 %v1365_v3, %s2950_s11 }
 0x381   : > { %1357 = vrot.lane.b32.xlu0 %v1355_v15, %s2951_s12 }
 0x3ef   : > { %v1367_v37 = vpop.permute.xlu0 %1366 }
 0x3f0   : > { %v1368_v38 = vsel %vm1348_vm4, %v1367_v37, %v3486_v36 }
 0x3f1   : > { %1568 = vrot.lane.b32.xlu0 %v1368_v38, %s2952_s13  ;;  %1565 = vrot.lane.b32.xlu1 %v1368_v38, %s2953_s14 }
 0x3f3   : > { %v1358_v39 = vpop.permute.xlu0 %1357 }
 0x3f4   : > { %vm3509_vm2 = vcmp.eq.f32.partialorder %v1354_v40, %v1358_v39 }
 0x3f5   : > { %1387 = vrot.lane.b32.xlu0 %v1368_v38, %s2954_s15  ;;  %1665 = vrot.lane.b32.xlu1 %v1368_v38, %s2955_s18 }
 0x3f9   : > { %1370 = vrot.lane.b32.xlu0 %v1368_v38, %s2956_s19  ;;  %1390 = vrot.lane.b32.xlu1 %v1368_v38, %s2957_s20 }
 0x3fd   : > { %1373 = vrot.lane.b32.xlu1 %v1368_v38, %s2958_s21 }
 0x463   : > { %v1566_v29 = vpop.permute.xlu1 %1565  ;;  %v1569_v32 = vpop.permute.xlu0 %1568 }
 0x464   : > { %v1571_v42 = vsel %vm3509_vm2, %v1566_v29, %v1569_v32  ;;  %v1938_v45 = vsel %vm3509_vm2, %v1569_v32, %v1566_v29 }
 0x465   : > { %1575 = vrot.lane.b32.xlu0 %v1571_v42, %s2959_s26 }
 0x467   : > { %v1666_v31 = vpop.permute.xlu1 %1665  ;;  %v1388_v44 = vpop.permute.xlu0 %1387 }
 0x468   : > { %v1668_v2 = vsel %vm3509_vm2, %v1368_v38, %v1666_v31  ;;  %v1846_v43 = vsel %vm3509_vm2, %v1666_v31, %v1368_v38 }
 0x469   : > { %1670 = vrot.lane.b32.xlu1 %v1668_v2, %s2959_s26  ;;  %1848 = vrot.lane.b32.xlu0 %v1846_v43, %s2959_s26  ;;  %v2313_v2 = vld [vmem:[%s3756_s6] sm:$0xff]  ;;  %v2314_v43 = vld [vmem:[%s3756_s6 + $0x8] sm:$0xff] }
 0x46b   : > { %v1391_v47 = vpop.permute.xlu1 %1390  ;;  %v1371_v48 = vpop.permute.xlu0 %1370 }
 0x46c   : > { %v1393_v46 = vsel %vm3509_vm2, %v1388_v44, %v1391_v47  ;;  %v2032_v7 = vsel %vm3509_vm2, %v1391_v47, %v1388_v44  ;;  %v2819_v44 = vpack.c.bf16 %v2314_v43, %v2313_v2  ;;  %v2315_v47 = vld [vmem:[%s3756_s6 + $0x10] sm:$0xff] }
 0x46d   : > { %1942 = vrot.lane.b32.xlu1 %v1938_v45, %s2959_s26  ;;  %1395 = vrot.lane.b32.xlu0 %v1393_v46, %s2959_s26  ;;  %v2316_v45 = vld [vmem:[%s3756_s6 + $0x18] sm:$0xff] }
 0x46e   : > { %v2823_v46 = vpack.c.bf16 %v2316_v45, %v2315_v47 }
 0x46f   : > { %v1374_v49 = vpop.permute.xlu1 %1373 }
 0x470   : > { %v1376_v50 = vsel %vm3509_vm2, %v1371_v48, %v1374_v49  ;;  %v2124_v52 = vsel %vm3509_vm2, %v1374_v49, %v1371_v48  ;;  %v2317_v48 = vld [vmem:[%s3756_s6 + $0x20] sm:$0xff]  ;;  %v2318_v49 = vld [vmem:[%s3756_s6 + $0x28] sm:$0xff] }
 0x471   : > { %2034 = vrot.lane.b32.xlu1 %v2032_v7, %s2959_s26  ;;  %1381 = vrot.lane.b32.xlu0 %v1376_v50, %s2959_s26  ;;  %v2827_v7 = vpack.c.bf16 %v2318_v49, %v2317_v48 }
 0x475   : > { %2127 = vrot.lane.b32.xlu1 %v2124_v52, %s2959_s26  ;;  %2221 = vperm.xlu0 %2899, %v2217_v51  }
 0x479   : > { %2226 = vperm.xlu1 %2930, %v2218_v53   ;;  %v2319_v53 = vld [vmem:[%s3756_s6 + $0x30] sm:$0xff] }
 0x47a   : > { %v2831_v55 = vpack.c.bf16 %v2320_v54, %v2319_v53 }
 0x4d7   : > { %v1576_v58 = vpop.permute.xlu0 %1575 }
 0x4d8   : > { %2726 = vmatprep.subr.msk.mxu1 %vm1573_vm11, %v1576_v58 }
 0x4d9   : > { %2727 = vmatpush3.msk.msra.mxu1 %vm1573_vm11, %v1576_v58 }
 0x4da   : > { %2729 = vmatmul.mubr.msk.f32.vlgmr.msra.gmra.mrb[2].mxu1 %vm1402_vm8, %v2599_v59 }
 0x4db   : > { %v1671_v61 = vpop.permute.xlu1 %1670  ;;  %v1849_v62 = vpop.permute.xlu0 %1848  ;;  %2733 = vmatprep.mubr.msk.f32.mxu1 %vm1402_vm8, %v2603_v1  ;;  %v2403_v1 = vld [vmem:[%s3757_s7] sm:$0xff] }
 0x4dc   : > { %2731 = vmatprep.subr.msk.mxu1 %vm3567_vm10, %v1671_v61 }
 0x4dd   : > { %2732 = vmatpush3.msk.msra.mxu1 %vm3567_vm10, %v1671_v61 }
 0x4de   : > { %2736 = vmatprep.subr.mxu1 %v3486_v36 }
 0x4df   : > { %v1396_v63 = vpop.permute.xlu0 %1395  ;;  %v1943_v18 = vpop.permute.xlu1 %1942 }
 0x4e0   : > { %2716 = vmatprep.subr.msk.mxu0 %vm3549_vm6, %v1396_v63 }
 0x4e1   : > { %2717 = vmatpush3.msk.msra.mxu0 %vm3549_vm6, %v1396_v63  ;;  %v2835_v63 = vpack.c.bf16 %v2404_v60, %v2403_v1 }
 0x4e2   : > { %2734 = vmatmul.mubr.msk.f32.vlgmr.msra.gmra.mrb[2].mxu1 %vm1402_vm8, %v2604_v0  ;;  %2719 = vmatmul.mubr.msk.f32.vlgmr.msra.gmra.mrb[2].mxu0 %vm1402_vm8, %v2591_v5 }
 0x4e3   : > { %2737 = vmatpush3.msra.mxu1 %v3486_v36  ;;  %v1382_v10 = vpop.permute.xlu0 %1381  ;;  %2738 = vmatprep.mubr.msk.f32.mxu1 %vm1402_vm8, %v2608_v8  ;;  %v2035_v21 = vpop.permute.xlu1 %2034 }
 0x4e4   : > { %2741 = vmatprep.subr.msk.mxu1 %vm3553_vm12, %v1849_v62  ;;  %2721 = vmatprep.subr.msk.mxu0 %vm1379_vm14, %v1382_v10 }
 0x4e5   : > { %2722 = vmatpush3.msk.msra.mxu0 %vm1379_vm14, %v1382_v10  ;;  %2723 = vmatprep.mubr.msk.f32.mxu0 %vm1402_vm8, %v1385_v9 }
 0x4e6   : > { %2820 = vmatprep.subr.bf16.mxu0 %v2819_v44 }
 0x4e7   : > { %v2128_v26 = vpop.permute.xlu1 %2127 }
 0x4ea   : > { %2739 = vmatmul.mubr.msk.f32.vlgmr.msra.gmra.mrb[2].mxu1 %vm1402_vm8, %v2609_v13  ;;  %2724 = vmatmul.mubr.msk.f32.vlgmr.msra.gmra.mrb[2].mxu0 %vm1402_vm8, %v1386_v16 }
 0x4eb   : > { %2742 = vmatpush3.msk.msra.mxu1 %vm3553_vm12, %v1849_v62  ;;  %2743 = vmatprep.mubr.msk.f32.mxu1 %vm1402_vm8, %v2612_v17 }
 0x4ec   : > { %2746 = vmatprep.subr.msk.mxu1 %vm1940_vm1, %v1943_v18  ;;  %2822 = vmatpush3.bf16.msra.mxu0 %v2819_v44 }
 0x4ed   : > { %2824 = vmatprep.subr.bf16.mxu0 %v2823_v46 }
 0x4f0   : > { %2826 = vmatpush3.bf16.msra.mxu0 %v2823_v46 }
 0x4f1   : > { %2828 = vmatprep.subr.bf16.mxu0 %v2827_v7 }
 0x4f2   : > { %2744 = vmatmul.mubr.msk.f32.vlgmr.msra.gmra.mrb[2].mxu1 %vm1402_vm8, %v2613_v19 }
 0x4f3   : > { %2747 = vmatpush3.msk.msra.mxu1 %vm1940_vm1, %v1943_v18  ;;  %2748 = vmatprep.mubr.msk.f32.mxu1 %vm1402_vm8, %v2617_v20 }
 0x4f4   : > { %2751 = vmatprep.subr.msk.mxu1 %vm3605_vm0, %v2035_v21  ;;  %v2222_v3 = vpop.permute.xlu0 %2221  ;;  %2830 = vmatpush3.bf16.msra.mxu0 %v2827_v7 }
 0x4f5   : > { %2832 = vmatprep.subr.bf16.mxu0 %v2831_v55 }
 0x4f8   : > { %v2227_v25 = vpop.permute.xlu1 %2226  ;;  %2834 = vmatpush3.bf16.msra.mxu0 %v2831_v55 }
 0x4f9   : > { %2836 = vmatprep.subr.bf16.mxu0 %v2835_v63 }
 0x4fa   : > { %2749 = vmatmul.mubr.msk.f32.vlgmr.msra.gmra.mrb[2].mxu1 %vm1402_vm8, %v2618_v22 }
 0x4fb   : > { %2752 = vmatpush3.msk.msra.mxu1 %vm3605_vm0, %v2035_v21  ;;  %2753 = vmatprep.mubr.msk.f32.mxu1 %vm1402_vm8, %v2622_v23 }
 0x4fc   : > { %2756 = vmatprep.subr.msk.mxu1 %vm2125_vm5, %v2128_v26 }
 0x502   : > { %2754 = vmatmul.mubr.msk.f32.vlgmr.msra.gmra.mrb[2].mxu1 %vm1402_vm8, %v2623_v27 }
 0x503   : > { %2757 = vmatpush3.msk.msra.mxu1 %vm2125_vm5, %v2128_v26  ;;  %2758 = vmatprep.mubr.msk.f32.mxu1 %vm1402_vm8, %v2627_v28 }
 0x50a   : > { %2759 = vmatmul.mubr.msk.f32.vlgmr.msra.gmra.mrb[2].mxu1 %vm1402_vm8, %v2628_v33 }
 0x5bd   : > { %v2725_v34 = vpop.f32.mrb[2].mxu0 }
 0x5be   : > { %v1556_v35 = vpop.f32.mrb[3].mxu0 }
 0x5dd   : > { %v2760_v6 = vpop.f32.mrb[2].mxu1 }
 0x5de   : > { %v2839_v4 = vadd.f32 %v2760_v6, %v2725_v34  ;;  %v2206_v36 = vpop.f32.mrb[3].mxu1 }
 0x5df   : > { %v2840_v24 = vadd.f32 %v2206_v36, %v1556_v35 }
 0x5e0   : > { %v2230_v15 = vadd.f32 %v2839_v4, %v2227_v25 }
 0x5e1   : > { %v2229_v37 = vadd.f32 %v2840_v24, %v2222_v3 }
 0x5e2   : > { %v3663_v38 = vmax.f32 %v2230_v15, 0.0 }
 0x5e3   : > { %v3665_v12 = vmax.f32 %v2229_v37, 0.0 }
 0x5e4   : > { %2236 = vrot.lane.b32.xlu1 %v3663_v38, %s2950_s11 }
 0x5e5   : > { %2233 = vrot.lane.b32.xlu0 %v3665_v12, %s2950_s11 }
 0x656   : > { %v2237_v14 = vpop.permute.xlu1 %2236 }
 0x657   : > { %v2234_v39 = vpop.permute.xlu0 %2233  ;;  %v2238_v40 = vsel %vm1348_vm4, %v2237_v14, %v3663_v38 }
 0x658   : > { %2241 = vrot.lane.b32.xlu1 %v2238_v40, %s2950_s11  ;;  %v2235_v29 = vsel %vm1348_vm4, %v2234_v39, %v3665_v12 }
 0x659   : > { %2239 = vrot.lane.b32.xlu0 %v2235_v29, %s2950_s11 }
 0x6ca   : > { %v2242_v32 = vpop.permute.xlu1 %2241 }
 0x6cb   : > { %v2244_v42 = vsel %vm1348_vm4, %v2242_v32, %v3663_v38  ;;  %v2240_v30 = vpop.permute.xlu0 %2239 }
 0x6cc   : > { %2249 = vrot.lane.b32.xlu1 %v2244_v42, %s2955_s18  ;;  %2267 = vrot.lane.b32.xlu0 %v2244_v42, %s2957_s20  ;;  %v2243_v31 = vsel %vm1348_vm4, %v2240_v30, %v3665_v12 }
 0x6d0   : > { %2273 = vrot.lane.b32.xlu1 %v2244_v42, %s2954_s15  ;;  %2247 = vrot.lane.b32.xlu0 %v2243_v31, %s2955_s18 }
 0x6d4   : > { %2271 = vrot.lane.b32.xlu1 %v2243_v31, %s2954_s15  ;;  %2265 = vrot.lane.b32.xlu0 %v2243_v31, %s2957_s20 }
 0x6d8   : > { %2295 = vrot.lane.b32.xlu1 %v2243_v31, %s2956_s19  ;;  %2289 = vrot.lane.b32.xlu0 %v2243_v31, %s2958_s21 }
 0x6dc   : > { %2297 = vrot.lane.b32.xlu1 %v2244_v42, %s2956_s19  ;;  %2291 = vrot.lane.b32.xlu0 %v2244_v42, %s2958_s21 }
 0x73e   : > { %v2250_v50 = vpop.permute.xlu1 %2249  ;;  %v2268_v51 = vpop.permute.xlu0 %2267 }
 0x73f   : > { %v2254_v52 = vsel %vm3509_vm2, %v2250_v50, %v2244_v42 }
 0x740   : > { %2259 = vrot.lane.b32.xlu1 %v2254_v52, %s2959_s26 }
 0x742   : > { %v2274_v56 = vpop.permute.xlu1 %2273  ;;  %v2248_v57 = vpop.permute.xlu0 %2247 }
 0x743   : > { %v2278_v58 = vsel %vm3509_vm2, %v2268_v51, %v2274_v56  ;;  %v2253_v59 = vsel %vm3509_vm2, %v2248_v57, %v2243_v31 }
 0x744   : > { %2283 = vrot.lane.b32.xlu1 %v2278_v58, %s2959_s26  ;;  %2257 = vrot.lane.b32.xlu0 %v2253_v59, %s2959_s26 }
 0x746   : > { %v2272_v61 = vpop.permute.xlu1 %2271  ;;  %v2266_v62 = vpop.permute.xlu0 %2265 }
 0x747   : > { %v2277_v0 = vsel %vm3509_vm2, %v2266_v62, %v2272_v61 }
 0x748   : > { %2281 = vrot.lane.b32.xlu0 %v2277_v0, %s2959_s26 }
 0x74a   : > { %v2296_v5 = vpop.permute.xlu1 %2295  ;;  %v2290_v8 = vpop.permute.xlu0 %2289 }
 0x74b   : > { %v2301_v9 = vsel %vm3509_vm2, %v2290_v8, %v2296_v5 }
 0x74c   : > { %2305 = vrot.lane.b32.xlu0 %v2301_v9, %s2959_s26 }
 0x74e   : > { %v2298_v10 = vpop.permute.xlu1 %2297  ;;  %v2292_v11 = vpop.permute.xlu0 %2291 }
 0x74f   : > { %v2302_v13 = vsel %vm3509_vm2, %v2292_v11, %v2298_v10 }
 0x750   : > { %2307 = vrot.lane.b32.xlu1 %v2302_v13, %s2959_s26  ;;  %s2639_s26 = sshll.u32 %s3801_s28, 4 }
 0x751   : > { %s305_s25 = scalar_lea.vmem %s3758_s8, %s2639_s26 }
 0x7b2   : > { %v2260_v17 = vpop.permute.xlu1 %2259 }
 0x7b3   : > { %v2264_v23 = vmax.f32 %v3663_v38, %v2260_v17 }
 0x7b6   : > { %v2258_v16 = vpop.permute.xlu0 %2257  ;;  %v2284_v21 = vpop.permute.xlu1 %2283 }
 0x7b7   : > { %v2263_v19 = vmax.f32 %v3665_v12, %v2258_v16  ;;  %v2288_v27 = vmax.f32 %v2264_v23, %v2284_v21 }
 0x7ba   : > { %v2282_v18 = vpop.permute.xlu0 %2281 }
 0x7bb   : > { %v2287_v20 = vmax.f32 %v2263_v19, %v2282_v18 }
 0x7be   : > { %v2306_v22 = vpop.permute.xlu0 %2305 }
 0x7bf   : > { %v2311_v26 = vmax.f32 %v2287_v20, %v2306_v22 }
 0x7c1   : > { %2777 = vmatprep.mubr.msk.f32.mxu0 %vm2321_vm13, %v2311_v26 }
 0x7c2   : > { %v2308_v28 = vpop.permute.xlu1 %2307 }
 0x7c3   : > { %v2312_v41 = vmax.f32 %v2288_v27, %v2308_v28 }
 0x7c5   : > { %2778 = vmatmul.mubr.msk.f32.vlgmr.msra.gmra.mrb[4].mxu0 %vm2321_vm13, %v2312_v41 }
 0x7c6   : > { %2838 = vmatpush3.bf16.msra.mxu0 %v2835_v63 }
 0x898   : > { %v2779_v33 = vpop.f32.mrb[4].mxu0 }
 0x899   : > { %v2394_v34 = vpop.f32.mrb[5].mxu0 }
 0x89a   : > { %2784 = vmatprep.mubr.msk.f32.mxu0 %vm2405_vm3, %v2394_v34 }
 0x89b   : > { %2785 = vmatmul.mubr.msk.f32.vlgmr.msra.gmra.mrb[6].mxu0 %vm2405_vm3, %v2779_v33 }
 0x96e   : > { %v2786_v35 = vpop.f32.mrb[6].mxu0 }
 0x96f   : > { %2488 = vst.msk [vmem:[%s305_s25 + $0x8] sm:$0xff] %vm379_vm9, %v2786_v35  ;;  %v2478_v6 = vpop.f32.mrb[7].mxu0 }
 0x970   : > { %2487 = vst.msk [vmem:[%s305_s25] sm:$0xff] %vm379_vm9, %v2478_v6 }
 0x971 PF: > { %s18_s27 = sadd.s32 1, %s2938_s27  }
 0x972   : > { %p15_p4 = scmp.ge.s32.totalorder %s18_s27, 4  }
 0x974   :  { %17 = sbr.rel (!%p15_p4) target bundleno = 1 (0x1), region = 98 }

</bundles_post_ra>
